<compile_context>
chip_gen: v7x
topology: tpu7x:2x2x1
jax: 0.10.0
libtpu: 0.0.40
codegen_flags: <defaults>
</compile_context>

<pallas_src>
import functools

import jax
import jax.numpy as jnp
from jax.experimental import pallas as pl
from jax.experimental.pallas import tpu as pltpu

# ---- small synthetic XLM-RoBERTa config -------------------------------------
VOCAB = 100
MAX_POS = 32
HIDDEN = 32
HEADS = 2
HEAD_DIM = HIDDEN // HEADS
FFN = 64
LAYERS = 2
NUM_LABELS = 1          # politeness score (regression head)
LOGIT_PAD = 128         # lane-dense padded logit width (sliced back in JAX)
PAD_IDX = 1             # XLM-R padding_idx
EPS = 1e-5

# TODO(synk): real module loads pretrained weights from
# 'BrachioLab/xlm-roberta-politeness'; here weights are deterministic synthetic.


# ---------------------------- weight-slab layout ------------------------------
def _build_layout():
    """Static row layout of the single (R, 128) weight slab.

    Matrices first (row offsets are multiples of 8 -> sublane-tile aligned),
    then 1-row bias / LayerNorm vectors.  Every block starts at lane 0, so no
    in-kernel slice lands mid 128-lane tile.
    """
    layout = {}
    off = 0

    def alloc(name, rows):
        nonlocal off
        layout[name] = off
        off += rows

    for l in range(LAYERS):
        for prefix in ("wq", "wk", "wv"):           # per-head (HIDDEN, HEAD_DIM)
            for h in range(HEADS):
                alloc(f"{prefix}_{l}_{h}", HIDDEN)
        for h in range(HEADS):                      # per-head (HEAD_DIM, HIDDEN)
            alloc(f"wo_{l}_{h}", HEAD_DIM)
        alloc(f"wi_{l}", HIDDEN)                    # (HIDDEN, FFN)
        alloc(f"wo2_{l}", FFN)                      # (FFN, HIDDEN)
    alloc("cls_dense_w", HIDDEN)                    # (HIDDEN, HIDDEN)
    alloc("cls_out_w", HIDDEN)                      # (HIDDEN, LOGIT_PAD)

    # --- 1-row vectors ---
    alloc("emb_ln_g", 1)
    alloc("emb_ln_b", 1)
    for l in range(LAYERS):
        for prefix in ("bq", "bk", "bv"):
            for h in range(HEADS):
                alloc(f"{prefix}_{l}_{h}", 1)       # (1, HEAD_DIM)
        alloc(f"bo_{l}", 1)
        alloc(f"ln1_g_{l}", 1)
        alloc(f"ln1_b_{l}", 1)
        alloc(f"bi_{l}", 1)
        alloc(f"bo2_{l}", 1)
        alloc(f"ln2_g_{l}", 1)
        alloc(f"ln2_b_{l}", 1)
    alloc("cls_dense_b", 1)
    alloc("cls_out_b", 1)
    return layout, off


_LAYOUT, _SLAB_ROWS = _build_layout()
_SLAB_ROWS_PADDED = ((_SLAB_ROWS + 7) // 8) * 8


# ---------------------------- fused Pallas kernel -----------------------------
def _fused_forward_kernel(emb_ref, mask_ref, slab_ref, logits_ref, *, batch, seq):
    rows = batch * seq

    def w(name, r, c):
        # Static ref view + load of a slab block (row-range, lanes [0, c)).
        o = _LAYOUT[name]
        return slab_ref[o:o + r, 0:c]

    def layernorm(x, gname, bname):
        g = w(gname, 1, HIDDEN)
        b = w(bname, 1, HIDDEN)
        mean = jnp.mean(x, axis=-1, keepdims=True)
        c = x - mean
        var = jnp.mean(c * c, axis=-1, keepdims=True)
        return c * jax.lax.rsqrt(var + EPS) * g + b

    # Embedding LayerNorm (no residual -> no useless zero tensor).
    x = layernorm(emb_ref[...], "emb_ln_g", "emb_ln_b")              # (rows, H)

    # Additive key mask, shared by every layer / head; hoisted out of the loop.
    # NOTE: -1e9 (not -inf); a fully-padded sequence degrades to a uniform
    # softmax over padding keys, which is benign for the CLS logit here.
    bias = (1.0 - mask_ref[...]) * (-1e9)                            # (B, S)
    # Batched-head ordering n = h*B + b (matches the q/k/v stack below).
    bias_hb = jnp.concatenate([bias[:, None, :]] * HEADS, axis=0)    # (H*B, 1, S)
    scale = 1.0 / (HEAD_DIM ** 0.5)

    for l in range(LAYERS):                    # static unroll (LAYERS == 2)
        # ---- per-head Q/K/V projections straight from x ----
        # Weights were pre-split per head at pack time, so there are no
        # mid-tile lane slices of activations here.
        def proj(wprefix, bprefix):
            per_head = []
            for h in range(HEADS):             # static unroll (HEADS == 2)
                wm = w(f"{wprefix}_{l}_{h}", HIDDEN, HEAD_DIM)        # (H, D)
                bv = w(f"{bprefix}_{l}_{h}", 1, HEAD_DIM)             # (1, D)
                per_head.append(
                    jnp.dot(x, wm, preferred_element_type=jnp.float32) + bv)
            # (HEADS, rows, D) -> (HEADS*B, S, D); tile-aligned regroup.
            return jnp.stack(per_head, axis=0).reshape(
                HEADS * batch, seq, HEAD_DIM)

        q = proj("wq", "bq")
        k = proj("wk", "bk")
        v = proj("wv", "bv")

        # ---- both heads batched in one attention pass ----
        # (May still lower a tiny per-batch transpose of k; acceptable at this
        # size -- each k tile is (8, 16), well inside one vreg.)
        s = jnp.einsum('bqd,bkd->bqk', q, k,
                       preferred_element_type=jnp.float32)           # (H*B,S,S)
        s = s * scale + bias_hb
        s = s - jnp.max(s, axis=-1, keepdims=True)
        p = jnp.exp(s)
        p = p * pl.reciprocal(jnp.sum(p, axis=-1, keepdims=True), approx=True)
        ctx = jnp.einsum('bqk,bkd->bqd', p, v,
                         preferred_element_type=jnp.float32)          # (H*B,S,D)
        ctx = ctx.reshape(HEADS, rows, HEAD_DIM)

        # Head merge folded into the output projection (linearity); start from
        # head 0's product instead of a zeros accumulator.
        attn = jnp.dot(ctx[0], w(f"wo_{l}_0", HEAD_DIM, HIDDEN),
                       preferred_element_type=jnp.float32)
        for h in range(1, HEADS):
            attn = attn + jnp.dot(ctx[h], w(f"wo_{l}_{h}", HEAD_DIM, HIDDEN),
                                  preferred_element_type=jnp.float32)
        attn = attn + w(f"bo_{l}", 1, HIDDEN)

        x = layernorm(attn + x, f"ln1_g_{l}", f"ln1_b_{l}")

        # ---- feed-forward ----
        h_mid = (jnp.dot(x, w(f"wi_{l}", HIDDEN, FFN),
                         preferred_element_type=jnp.float32)
                 + w(f"bi_{l}", 1, FFN))
        # TODO(synk): HF XLM-R uses erf-gelu; tanh approximation kept here.
        h_mid = jax.nn.gelu(h_mid, approximate=True)
        ffn = (jnp.dot(h_mid, w(f"wo2_{l}", FFN, HIDDEN),
                       preferred_element_type=jnp.float32)
               + w(f"bo2_{l}", 1, HIDDEN))
        x = layernorm(ffn + x, f"ln2_g_{l}", f"ln2_b_{l}")

    # ---- CLS selection in-kernel + classification head on (B, HIDDEN) ----
    cls_x = x.reshape(batch, seq, HIDDEN)[:, 0, :]                    # (B, H)
    hcls = jnp.tanh(
        jnp.dot(cls_x, w("cls_dense_w", HIDDEN, HIDDEN),
                preferred_element_type=jnp.float32)
        + w("cls_dense_b", 1, HIDDEN))
    logits_ref[...] = (
        jnp.dot(hcls, w("cls_out_w", HIDDEN, LOGIT_PAD),
                preferred_element_type=jnp.float32)
        + w("cls_out_b", 1, LOGIT_PAD))                               # (B, 128)


def fused_forward(emb, mask_f, slab, batch, seq):
    rows = batch * seq
    inputs = (emb, mask_f, slab)

    # Advisory cost estimate for XLA scheduling around the custom call.
    flops_layer = (
        3 * HEADS * 2 * rows * HIDDEN * HEAD_DIM            # per-head Q/K/V
        + 2 * 2 * (HEADS * batch) * seq * seq * HEAD_DIM    # scores + ctx
        + HEADS * 2 * rows * HEAD_DIM * HIDDEN              # out-proj (merged)
        + 2 * rows * HIDDEN * FFN + 2 * rows * FFN * HIDDEN # FFN in + out
    )
    flops = (LAYERS * flops_layer
             + 2 * batch * HIDDEN * HIDDEN                  # cls dense
             + 2 * batch * HIDDEN * LOGIT_PAD)              # cls out (padded)
    transcendentals = (LAYERS * (HEADS * batch * seq * seq + rows * FFN)
                       + batch * HIDDEN + (2 * LAYERS + 1) * rows)
    bytes_accessed = (sum(int(a.size) * a.dtype.itemsize for a in inputs)
                      + batch * LOGIT_PAD * 4)

    kernel = functools.partial(_fused_forward_kernel, batch=batch, seq=seq)
    return pl.pallas_call(
        kernel,
        grid=(1,),
        in_specs=[pl.BlockSpec(tuple(a.shape), lambda i: (0, 0)) for a in inputs],
        out_specs=pl.BlockSpec((batch, LOGIT_PAD), lambda i: (0, 0)),
        out_shape=jax.ShapeDtypeStruct((batch, LOGIT_PAD), jnp.float32),
        cost_estimate=pl.CostEstimate(flops=flops,
                                      transcendentals=transcendentals,
                                      bytes_accessed=bytes_accessed),
        compiler_params=pltpu.CompilerParams(dimension_semantics=("arbitrary",)),
    )(*inputs)


# ---------------------------- parameters --------------------------------------
def init_params(key):
    ks = jax.random.split(key, 8 + LAYERS)

    def normal(k, shape):
        return 0.02 * jax.random.normal(k, shape, jnp.float32)

    layers = []
    for l in range(LAYERS):
        lk = jax.random.split(ks[5 + l], 6)
        layers.append(dict(
            wq=normal(lk[0], (HIDDEN, HIDDEN)), bq=jnp.zeros((HIDDEN,), jnp.float32),
            wk=normal(lk[1], (HIDDEN, HIDDEN)), bk=jnp.zeros((HIDDEN,), jnp.float32),
            wv=normal(lk[2], (HIDDEN, HIDDEN)), bv=jnp.zeros((HIDDEN,), jnp.float32),
            wo=normal(lk[3], (HIDDEN, HIDDEN)), bo=jnp.zeros((HIDDEN,), jnp.float32),
            ln1_g=jnp.ones((HIDDEN,), jnp.float32), ln1_b=jnp.zeros((HIDDEN,), jnp.float32),
            wi=normal(lk[4], (HIDDEN, FFN)), bi=jnp.zeros((FFN,), jnp.float32),
            wo2=normal(lk[5], (FFN, HIDDEN)), bo2=jnp.zeros((HIDDEN,), jnp.float32),
            ln2_g=jnp.ones((HIDDEN,), jnp.float32), ln2_b=jnp.zeros((HIDDEN,), jnp.float32),
        ))

    params = dict(
        word_emb=normal(ks[0], (VOCAB, HIDDEN)),
        pos_emb=normal(ks[1], (MAX_POS, HIDDEN)),
        type_emb=normal(ks[2], (1, HIDDEN)),
        emb_ln_g=jnp.ones((HIDDEN,), jnp.float32),
        emb_ln_b=jnp.zeros((HIDDEN,), jnp.float32),
        cls_dense_w=normal(ks[3], (HIDDEN, HIDDEN)),
        cls_dense_b=jnp.zeros((HIDDEN,), jnp.float32),
        cls_out_w=normal(ks[4], (HIDDEN, NUM_LABELS)),
        cls_out_b=jnp.zeros((NUM_LABELS,), jnp.float32),
        layers=layers,
    )
    params["slab"] = pack_params(params)
    return params


def pack_params(params):
    """Pack every weight / bias into one lane-dense (R, 128) f32 slab.

    Q/K/V and the attention output projection are pre-split per head so the
    kernel only ever reads static row-ranges starting at lane 0.
    """
    slab = jnp.zeros((_SLAB_ROWS_PADDED, 128), jnp.float32)

    def put(name, arr2d):
        nonlocal slab
        r, c = arr2d.shape
        o = _LAYOUT[name]
        slab = slab.at[o:o + r, :c].set(arr2d.astype(jnp.float32))

    for l, lp in enumerate(params["layers"]):
        for h in range(HEADS):
            lo, hi = h * HEAD_DIM, (h + 1) * HEAD_DIM
            put(f"wq_{l}_{h}", lp["wq"][:, lo:hi])
            put(f"wk_{l}_{h}", lp["wk"][:, lo:hi])
            put(f"wv_{l}_{h}", lp["wv"][:, lo:hi])
            put(f"wo_{l}_{h}", lp["wo"][lo:hi, :])
            put(f"bq_{l}_{h}", lp["bq"][lo:hi].reshape(1, HEAD_DIM))
            put(f"bk_{l}_{h}", lp["bk"][lo:hi].reshape(1, HEAD_DIM))
            put(f"bv_{l}_{h}", lp["bv"][lo:hi].reshape(1, HEAD_DIM))
        put(f"wi_{l}", lp["wi"])
        put(f"wo2_{l}", lp["wo2"])
        put(f"bo_{l}", lp["bo"].reshape(1, HIDDEN))
        put(f"ln1_g_{l}", lp["ln1_g"].reshape(1, HIDDEN))
        put(f"ln1_b_{l}", lp["ln1_b"].reshape(1, HIDDEN))
        put(f"bi_{l}", lp["bi"].reshape(1, FFN))
        put(f"bo2_{l}", lp["bo2"].reshape(1, HIDDEN))
        put(f"ln2_g_{l}", lp["ln2_g"].reshape(1, HIDDEN))
        put(f"ln2_b_{l}", lp["ln2_b"].reshape(1, HIDDEN))

    put("emb_ln_g", params["emb_ln_g"].reshape(1, HIDDEN))
    put("emb_ln_b", params["emb_ln_b"].reshape(1, HIDDEN))
    put("cls_dense_w", params["cls_dense_w"])
    put("cls_dense_b", params["cls_dense_b"].reshape(1, HIDDEN))
    put("cls_out_w",
        jnp.pad(params["cls_out_w"], ((0, 0), (0, LOGIT_PAD - NUM_LABELS))))
    put("cls_out_b",
        jnp.pad(params["cls_out_b"], (0, LOGIT_PAD - NUM_LABELS)).reshape(1, LOGIT_PAD))
    return slab


# ---------------------------- forward pass -------------------------------------
def politeness_classifier_forward(params, input_ids, attention_mask):
    B, S = input_ids.shape
    mask_i = attention_mask.astype(jnp.int32)

    # XLM-R position ids (padding_idx=1): positions only advance on real tokens.
    pos_ids = jnp.cumsum(mask_i, axis=1) * mask_i + PAD_IDX

    # Embeddings (gathers stay in plain JAX glue).
    emb = (jnp.take(params["word_emb"], input_ids, axis=0)
           + jnp.take(params["pos_emb"], pos_ids, axis=0)
           + params["type_emb"][0])                        # token_type_ids == 0
    emb = emb.reshape(B * S, HIDDEN).astype(jnp.float32)
    mask_f = attention_mask.astype(jnp.float32)            # (B, S)

    # Entire encoder + classification head in ONE fused Pallas kernel.
    logits_pad = fused_forward(emb, mask_f, params["slab"], B, S)    # (B, 128)

    # Slice the lane-padded logits back to NUM_LABELS.
    return logits_pad[:, :NUM_LABELS]                       # (B, NUM_LABELS)


# ---------------------------- demo ---------------------------------------------
if __name__ == "__main__":
    key = jax.random.PRNGKey(0)
    k_params, k_ids = jax.random.split(key)

    params = init_params(k_params)

    B, S = 2, 8
    input_ids = jax.random.randint(k_ids, (B, S), minval=2, maxval=VOCAB, dtype=jnp.int32)
    # second example has two padding positions at the end
    attention_mask = jnp.array([[1] * S, [1] * (S - 2) + [0, 0]], dtype=jnp.int32)
    input_ids = jnp.where(attention_mask == 1, input_ids, PAD_IDX)

    logits = politeness_classifier_forward(params, input_ids, attention_mask)
    logits = jax.block_until_ready(logits)
    assert logits.shape == (B, NUM_LABELS)
    print("KERNEL_OK")
</pallas_src>

<mosaic_0001>
module attributes {stable_mosaic.version = 11 : i64} {
  func.func @_fused_forward_kernel(%arg0: i32, %arg1: memref<16x32xf32, #tpu.memory_space<vmem>>, %arg2: memref<2x8xf32, #tpu.memory_space<vmem>>, %arg3: memref<736x128xf32, #tpu.memory_space<vmem>>, %arg4: memref<2x128xf32, #tpu.memory_space<vmem>>) attributes {dimension_semantics = [#tpu.dimension_semantics<arbitrary>], iteration_bounds = array<i64: 1>, scalar_prefetch = 0 : i64, scratch_operands = 0 : i64, tpu.core_type = #tpu.core_type<tc>, window_params = [{pipeline_mode = #tpu.pipeline_mode<synchronous>, transform_indices = @transform_0, window_bounds = array<i64: 16, 32>}, {pipeline_mode = #tpu.pipeline_mode<synchronous>, transform_indices = @transform_1, window_bounds = array<i64: 2, 8>}, {pipeline_mode = #tpu.pipeline_mode<synchronous>, transform_indices = @transform_2, window_bounds = array<i64: 736, 128>}, {pipeline_mode = #tpu.pipeline_mode<synchronous>, transform_indices = @transform_3, window_bounds = array<i64: 2, 128>}]} {
    %c0 = arith.constant 0 : index
    %c0_0 = arith.constant 0 : index
    %0 = vector.load %arg1[%c0, %c0_0] : memref<16x32xf32, #tpu.memory_space<vmem>>, vector<16x32xf32>
    %c704 = arith.constant 704 : index
    %c0_1 = arith.constant 0 : index
    %1 = vector.load %arg3[%c704, %c0_1] : memref<736x128xf32, #tpu.memory_space<vmem>>, vector<1x32xf32>
    %c705 = arith.constant 705 : index
    %c0_2 = arith.constant 0 : index
    %2 = vector.load %arg3[%c705, %c0_2] : memref<736x128xf32, #tpu.memory_space<vmem>>, vector<1x32xf32>
    %cst = arith.constant dense<0.000000e+00> : vector<16xf32>
    %3 = vector.multi_reduction <add>, %0, %cst [1] : vector<16x32xf32> to vector<16xf32>
    %4 = vector.shape_cast %3 : vector<16xf32> to vector<16x1xf32>
    %cst_3 = arith.constant 3.200000e+01 : f32
    %5 = vector.broadcast %cst_3 : f32 to vector<16x1xf32>
    %6 = arith.divf %4, %5 : vector<16x1xf32>
    %7 = vector.broadcast %6 : vector<16x1xf32> to vector<16x32xf32>
    %8 = arith.subf %0, %7 : vector<16x32xf32>
    %9 = arith.mulf %8, %8 : vector<16x32xf32>
    %cst_4 = arith.constant dense<0.000000e+00> : vector<16xf32>
    %10 = vector.multi_reduction <add>, %9, %cst_4 [1] : vector<16x32xf32> to vector<16xf32>
    %11 = vector.shape_cast %10 : vector<16xf32> to vector<16x1xf32>
    %cst_5 = arith.constant 3.200000e+01 : f32
    %12 = vector.broadcast %cst_5 : f32 to vector<16x1xf32>
    %13 = arith.divf %11, %12 : vector<16x1xf32>
    %cst_6 = arith.constant 9.99999974E-6 : f32
    %14 = vector.broadcast %cst_6 : f32 to vector<16x1xf32>
    %15 = arith.addf %13, %14 : vector<16x1xf32>
    %16 = math.rsqrt %15 : vector<16x1xf32>
    %17 = vector.broadcast %16 : vector<16x1xf32> to vector<16x32xf32>
    %18 = arith.mulf %8, %17 : vector<16x32xf32>
    %19 = vector.broadcast %1 : vector<1x32xf32> to vector<16x32xf32>
    %20 = arith.mulf %18, %19 : vector<16x32xf32>
    %21 = vector.broadcast %2 : vector<1x32xf32> to vector<16x32xf32>
    %22 = arith.addf %20, %21 : vector<16x32xf32>
    %c0_7 = arith.constant 0 : index
    %c0_8 = arith.constant 0 : index
    %23 = vector.load %arg2[%c0_7, %c0_8] : memref<2x8xf32, #tpu.memory_space<vmem>>, vector<2x8xf32>
    %cst_9 = arith.constant 1.000000e+00 : f32
    %24 = vector.broadcast %cst_9 : f32 to vector<2x8xf32>
    %25 = arith.subf %24, %23 : vector<2x8xf32>
    %cst_10 = arith.constant -1.000000e+09 : f32
    %26 = vector.broadcast %cst_10 : f32 to vector<2x8xf32>
    %27 = arith.mulf %25, %26 : vector<2x8xf32>
    %28 = vector.shape_cast %27 : vector<2x8xf32> to vector<2x1x8xf32>
    %29 = tpu.concatenate %28, %28 in 0 : vector<2x1x8xf32>, vector<2x1x8xf32> -> vector<4x1x8xf32>
    %c0_11 = arith.constant 0 : index
    %c0_12 = arith.constant 0 : index
    %30 = vector.load %arg3[%c0_11, %c0_12] : memref<736x128xf32, #tpu.memory_space<vmem>>, vector<32x16xf32>
    %c706 = arith.constant 706 : index
    %c0_13 = arith.constant 0 : index
    %31 = vector.load %arg3[%c706, %c0_13] : memref<736x128xf32, #tpu.memory_space<vmem>>, vector<1x16xf32>
    %cst_14 = arith.constant dense<0.000000e+00> : vector<16x16xf32>
    %32 = tpu.matmul %22, %30, %cst_14 {dimension_numbers = #tpu.dot_dimension_numbers<[1], [0], [0], [1], [0, 0, 1, 1], [], []>} : vector<16x32xf32>, vector<32x16xf32>, vector<16x16xf32> -> vector<16x16xf32>
    %33 = vector.broadcast %31 : vector<1x16xf32> to vector<16x16xf32>
    %34 = arith.addf %32, %33 : vector<16x16xf32>
    %c32 = arith.constant 32 : index
    %c0_15 = arith.constant 0 : index
    %35 = vector.load %arg3[%c32, %c0_15] : memref<736x128xf32, #tpu.memory_space<vmem>>, vector<32x16xf32>
    %c707 = arith.constant 707 : index
    %c0_16 = arith.constant 0 : index
    %36 = vector.load %arg3[%c707, %c0_16] : memref<736x128xf32, #tpu.memory_space<vmem>>, vector<1x16xf32>
    %cst_17 = arith.constant dense<0.000000e+00> : vector<16x16xf32>
    %37 = tpu.matmul %22, %35, %cst_17 {dimension_numbers = #tpu.dot_dimension_numbers<[1], [0], [0], [1], [0, 0, 1, 1], [], []>} : vector<16x32xf32>, vector<32x16xf32>, vector<16x16xf32> -> vector<16x16xf32>
    %38 = vector.broadcast %36 : vector<1x16xf32> to vector<16x16xf32>
    %39 = arith.addf %37, %38 : vector<16x16xf32>
    %40 = vector.shape_cast %34 : vector<16x16xf32> to vector<1x16x16xf32>
    %41 = vector.shape_cast %39 : vector<16x16xf32> to vector<1x16x16xf32>
    %42 = tpu.concatenate %40, %41 in 0 : vector<1x16x16xf32>, vector<1x16x16xf32> -> vector<2x16x16xf32>
    %43 = vector.shape_cast %42 : vector<2x16x16xf32> to vector<4x8x16xf32>
    %c64 = arith.constant 64 : index
    %c0_18 = arith.constant 0 : index
    %44 = vector.load %arg3[%c64, %c0_18] : memref<736x128xf32, #tpu.memory_space<vmem>>, vector<32x16xf32>
    %c708 = arith.constant 708 : index
    %c0_19 = arith.constant 0 : index
    %45 = vector.load %arg3[%c708, %c0_19] : memref<736x128xf32, #tpu.memory_space<vmem>>, vector<1x16xf32>
    %cst_20 = arith.constant dense<0.000000e+00> : vector<16x16xf32>
    %46 = tpu.matmul %22, %44, %cst_20 {dimension_numbers = #tpu.dot_dimension_numbers<[1], [0], [0], [1], [0, 0, 1, 1], [], []>} : vector<16x32xf32>, vector<32x16xf32>, vector<16x16xf32> -> vector<16x16xf32>
    %47 = vector.broadcast %45 : vector<1x16xf32> to vector<16x16xf32>
    %48 = arith.addf %46, %47 : vector<16x16xf32>
    %c96 = arith.constant 96 : index
    %c0_21 = arith.constant 0 : index
    %49 = vector.load %arg3[%c96, %c0_21] : memref<736x128xf32, #tpu.memory_space<vmem>>, vector<32x16xf32>
    %c709 = arith.constant 709 : index
    %c0_22 = arith.constant 0 : index
    %50 = vector.load %arg3[%c709, %c0_22] : memref<736x128xf32, #tpu.memory_space<vmem>>, vector<1x16xf32>
    %cst_23 = arith.constant dense<0.000000e+00> : vector<16x16xf32>
    %51 = tpu.matmul %22, %49, %cst_23 {dimension_numbers = #tpu.dot_dimension_numbers<[1], [0], [0], [1], [0, 0, 1, 1], [], []>} : vector<16x32xf32>, vector<32x16xf32>, vector<16x16xf32> -> vector<16x16xf32>
    %52 = vector.broadcast %50 : vector<1x16xf32> to vector<16x16xf32>
    %53 = arith.addf %51, %52 : vector<16x16xf32>
    %54 = vector.shape_cast %48 : vector<16x16xf32> to vector<1x16x16xf32>
    %55 = vector.shape_cast %53 : vector<16x16xf32> to vector<1x16x16xf32>
    %56 = tpu.concatenate %54, %55 in 0 : vector<1x16x16xf32>, vector<1x16x16xf32> -> vector<2x16x16xf32>
    %57 = vector.shape_cast %56 : vector<2x16x16xf32> to vector<4x8x16xf32>
    %c128 = arith.constant 128 : index
    %c0_24 = arith.constant 0 : index
    %58 = vector.load %arg3[%c128, %c0_24] : memref<736x128xf32, #tpu.memory_space<vmem>>, vector<32x16xf32>
    %c710 = arith.constant 710 : index
    %c0_25 = arith.constant 0 : index
    %59 = vector.load %arg3[%c710, %c0_25] : memref<736x128xf32, #tpu.memory_space<vmem>>, vector<1x16xf32>
    %cst_26 = arith.constant dense<0.000000e+00> : vector<16x16xf32>
    %60 = tpu.matmul %22, %58, %cst_26 {dimension_numbers = #tpu.dot_dimension_numbers<[1], [0], [0], [1], [0, 0, 1, 1], [], []>} : vector<16x32xf32>, vector<32x16xf32>, vector<16x16xf32> -> vector<16x16xf32>
    %61 = vector.broadcast %59 : vector<1x16xf32> to vector<16x16xf32>
    %62 = arith.addf %60, %61 : vector<16x16xf32>
    %c160 = arith.constant 160 : index
    %c0_27 = arith.constant 0 : index
    %63 = vector.load %arg3[%c160, %c0_27] : memref<736x128xf32, #tpu.memory_space<vmem>>, vector<32x16xf32>
    %c711 = arith.constant 711 : index
    %c0_28 = arith.constant 0 : index
    %64 = vector.load %arg3[%c711, %c0_28] : memref<736x128xf32, #tpu.memory_space<vmem>>, vector<1x16xf32>
    %cst_29 = arith.constant dense<0.000000e+00> : vector<16x16xf32>
    %65 = tpu.matmul %22, %63, %cst_29 {dimension_numbers = #tpu.dot_dimension_numbers<[1], [0], [0], [1], [0, 0, 1, 1], [], []>} : vector<16x32xf32>, vector<32x16xf32>, vector<16x16xf32> -> vector<16x16xf32>
    %66 = vector.broadcast %64 : vector<1x16xf32> to vector<16x16xf32>
    %67 = arith.addf %65, %66 : vector<16x16xf32>
    %68 = vector.shape_cast %62 : vector<16x16xf32> to vector<1x16x16xf32>
    %69 = vector.shape_cast %67 : vector<16x16xf32> to vector<1x16x16xf32>
    %70 = tpu.concatenate %68, %69 in 0 : vector<1x16x16xf32>, vector<1x16x16xf32> -> vector<2x16x16xf32>
    %71 = vector.shape_cast %70 : vector<2x16x16xf32> to vector<4x8x16xf32>
    "tpu.trace_start"() <{level = 10 : i32, message = "bqd,bkd->bqk"}> : () -> ()
    %cst_30 = arith.constant dense<0.000000e+00> : vector<4x8x8xf32>
    %72 = tpu.matmul %43, %57, %cst_30 {dimension_numbers = #tpu.dot_dimension_numbers<[2], [2], [1], [1], [0, 0, 0, 1, 1, 1], [0], [0]>} : vector<4x8x16xf32>, vector<4x8x16xf32>, vector<4x8x8xf32> -> vector<4x8x8xf32>
    "tpu.trace_stop"() : () -> ()
    %cst_31 = arith.constant 2.500000e-01 : f32
    %73 = vector.broadcast %cst_31 : f32 to vector<4x8x8xf32>
    %74 = arith.mulf %72, %73 : vector<4x8x8xf32>
    %75 = vector.broadcast %29 : vector<4x1x8xf32> to vector<4x8x8xf32>
    %76 = arith.addf %74, %75 : vector<4x8x8xf32>
    %cst_32 = arith.constant dense<0xFF800000> : vector<4x8xf32>
    %77 = vector.multi_reduction <maximumf>, %76, %cst_32 [2] : vector<4x8x8xf32> to vector<4x8xf32>
    %78 = vector.shape_cast %77 : vector<4x8xf32> to vector<4x8x1xf32>
    %79 = vector.broadcast %78 : vector<4x8x1xf32> to vector<4x8x8xf32>
    %80 = arith.subf %76, %79 : vector<4x8x8xf32>
    %81 = math.exp %80 : vector<4x8x8xf32>
    %cst_33 = arith.constant dense<0.000000e+00> : vector<4x8xf32>
    %82 = vector.multi_reduction <add>, %81, %cst_33 [2] : vector<4x8x8xf32> to vector<4x8xf32>
    %83 = vector.shape_cast %82 : vector<4x8xf32> to vector<4x8x1xf32>
    %84 = tpu.reciprocal %83 {approx = true} : vector<4x8x1xf32> -> vector<4x8x1xf32>
    %85 = vector.broadcast %84 : vector<4x8x1xf32> to vector<4x8x8xf32>
    %86 = arith.mulf %81, %85 : vector<4x8x8xf32>
    "tpu.trace_start"() <{level = 10 : i32, message = "bqk,bkd->bqd"}> : () -> ()
    %cst_34 = arith.constant dense<0.000000e+00> : vector<4x8x16xf32>
    %87 = tpu.matmul %86, %71, %cst_34 {dimension_numbers = #tpu.dot_dimension_numbers<[2], [1], [1], [2], [0, 0, 0, 1, 1, 2], [0], [0]>} : vector<4x8x8xf32>, vector<4x8x16xf32>, vector<4x8x16xf32> -> vector<4x8x16xf32>
    "tpu.trace_stop"() : () -> ()
    %88 = vector.shape_cast %87 : vector<4x8x16xf32> to vector<2x16x16xf32>
    %89 = vector.extract_strided_slice %88 {offsets = [0, 0, 0], sizes = [1, 16, 16], strides = [1, 1, 1]} : vector<2x16x16xf32> to vector<1x16x16xf32>
    %90 = vector.shape_cast %89 : vector<1x16x16xf32> to vector<16x16xf32>
    %c192 = arith.constant 192 : index
    %c0_35 = arith.constant 0 : index
    %91 = vector.load %arg3[%c192, %c0_35] : memref<736x128xf32, #tpu.memory_space<vmem>>, vector<16x32xf32>
    %cst_36 = arith.constant dense<0.000000e+00> : vector<16x32xf32>
    %92 = tpu.matmul %90, %91, %cst_36 {dimension_numbers = #tpu.dot_dimension_numbers<[1], [0], [0], [1], [0, 0, 1, 1], [], []>} : vector<16x16xf32>, vector<16x32xf32>, vector<16x32xf32> -> vector<16x32xf32>
    %93 = vector.extract_strided_slice %88 {offsets = [1, 0, 0], sizes = [1, 16, 16], strides = [1, 1, 1]} : vector<2x16x16xf32> to vector<1x16x16xf32>
    %94 = vector.shape_cast %93 : vector<1x16x16xf32> to vector<16x16xf32>
    %c208 = arith.constant 208 : index
    %c0_37 = arith.constant 0 : index
    %95 = vector.load %arg3[%c208, %c0_37] : memref<736x128xf32, #tpu.memory_space<vmem>>, vector<16x32xf32>
    %cst_38 = arith.constant dense<0.000000e+00> : vector<16x32xf32>
    %96 = tpu.matmul %94, %95, %cst_38 {dimension_numbers = #tpu.dot_dimension_numbers<[1], [0], [0], [1], [0, 0, 1, 1], [], []>} : vector<16x16xf32>, vector<16x32xf32>, vector<16x32xf32> -> vector<16x32xf32>
    %97 = arith.addf %92, %96 : vector<16x32xf32>
    %c712 = arith.constant 712 : index
    %c0_39 = arith.constant 0 : index
    %98 = vector.load %arg3[%c712, %c0_39] : memref<736x128xf32, #tpu.memory_space<vmem>>, vector<1x32xf32>
    %99 = vector.broadcast %98 : vector<1x32xf32> to vector<16x32xf32>
    %100 = arith.addf %97, %99 : vector<16x32xf32>
    %101 = arith.addf %100, %22 : vector<16x32xf32>
    %c713 = arith.constant 713 : index
    %c0_40 = arith.constant 0 : index
    %102 = vector.load %arg3[%c713, %c0_40] : memref<736x128xf32, #tpu.memory_space<vmem>>, vector<1x32xf32>
    %c714 = arith.constant 714 : index
    %c0_41 = arith.constant 0 : index
    %103 = vector.load %arg3[%c714, %c0_41] : memref<736x128xf32, #tpu.memory_space<vmem>>, vector<1x32xf32>
    %cst_42 = arith.constant dense<0.000000e+00> : vector<16xf32>
    %104 = vector.multi_reduction <add>, %101, %cst_42 [1] : vector<16x32xf32> to vector<16xf32>
    %105 = vector.shape_cast %104 : vector<16xf32> to vector<16x1xf32>
    %cst_43 = arith.constant 3.200000e+01 : f32
    %106 = vector.broadcast %cst_43 : f32 to vector<16x1xf32>
    %107 = arith.divf %105, %106 : vector<16x1xf32>
    %108 = vector.broadcast %107 : vector<16x1xf32> to vector<16x32xf32>
    %109 = arith.subf %101, %108 : vector<16x32xf32>
    %110 = arith.mulf %109, %109 : vector<16x32xf32>
    %cst_44 = arith.constant dense<0.000000e+00> : vector<16xf32>
    %111 = vector.multi_reduction <add>, %110, %cst_44 [1] : vector<16x32xf32> to vector<16xf32>
    %112 = vector.shape_cast %111 : vector<16xf32> to vector<16x1xf32>
    %cst_45 = arith.constant 3.200000e+01 : f32
    %113 = vector.broadcast %cst_45 : f32 to vector<16x1xf32>
    %114 = arith.divf %112, %113 : vector<16x1xf32>
    %cst_46 = arith.constant 9.99999974E-6 : f32
    %115 = vector.broadcast %cst_46 : f32 to vector<16x1xf32>
    %116 = arith.addf %114, %115 : vector<16x1xf32>
    %117 = math.rsqrt %116 : vector<16x1xf32>
    %118 = vector.broadcast %117 : vector<16x1xf32> to vector<16x32xf32>
    %119 = arith.mulf %109, %118 : vector<16x32xf32>
    %120 = vector.broadcast %102 : vector<1x32xf32> to vector<16x32xf32>
    %121 = arith.mulf %119, %120 : vector<16x32xf32>
    %122 = vector.broadcast %103 : vector<1x32xf32> to vector<16x32xf32>
    %123 = arith.addf %121, %122 : vector<16x32xf32>
    %c224 = arith.constant 224 : index
    %c0_47 = arith.constant 0 : index
    %124 = vector.load %arg3[%c224, %c0_47] : memref<736x128xf32, #tpu.memory_space<vmem>>, vector<32x64xf32>
    %cst_48 = arith.constant dense<0.000000e+00> : vector<16x64xf32>
    %125 = tpu.matmul %123, %124, %cst_48 {dimension_numbers = #tpu.dot_dimension_numbers<[1], [0], [0], [1], [0, 0, 1, 1], [], []>} : vector<16x32xf32>, vector<32x64xf32>, vector<16x64xf32> -> vector<16x64xf32>
    %c715 = arith.constant 715 : index
    %c0_49 = arith.constant 0 : index
    %126 = vector.load %arg3[%c715, %c0_49] : memref<736x128xf32, #tpu.memory_space<vmem>>, vector<1x64xf32>
    %127 = vector.broadcast %126 : vector<1x64xf32> to vector<16x64xf32>
    %128 = arith.addf %125, %127 : vector<16x64xf32>
    %129 = arith.mulf %128, %128 : vector<16x64xf32>
    %130 = arith.mulf %128, %129 : vector<16x64xf32>
    %cst_50 = arith.constant 4.471500e-02 : f32
    %131 = vector.broadcast %cst_50 : f32 to vector<16x64xf32>
    %132 = arith.mulf %131, %130 : vector<16x64xf32>
    %133 = arith.addf %128, %132 : vector<16x64xf32>
    %cst_51 = arith.constant 0.797884583 : f32
    %134 = vector.broadcast %cst_51 : f32 to vector<16x64xf32>
    %135 = arith.mulf %134, %133 : vector<16x64xf32>
    %136 = math.tanh %135 : vector<16x64xf32>
    %cst_52 = arith.constant 1.000000e+00 : f32
    %137 = vector.broadcast %cst_52 : f32 to vector<16x64xf32>
    %138 = arith.addf %137, %136 : vector<16x64xf32>
    %cst_53 = arith.constant 5.000000e-01 : f32
    %139 = vector.broadcast %cst_53 : f32 to vector<16x64xf32>
    %140 = arith.mulf %139, %138 : vector<16x64xf32>
    %141 = arith.mulf %128, %140 : vector<16x64xf32>
    %c256 = arith.constant 256 : index
    %c0_54 = arith.constant 0 : index
    %142 = vector.load %arg3[%c256, %c0_54] : memref<736x128xf32, #tpu.memory_space<vmem>>, vector<64x32xf32>
    %cst_55 = arith.constant dense<0.000000e+00> : vector<16x32xf32>
    %143 = tpu.matmul %141, %142, %cst_55 {dimension_numbers = #tpu.dot_dimension_numbers<[1], [0], [0], [1], [0, 0, 1, 1], [], []>} : vector<16x64xf32>, vector<64x32xf32>, vector<16x32xf32> -> vector<16x32xf32>
    %c716 = arith.constant 716 : index
    %c0_56 = arith.constant 0 : index
    %144 = vector.load %arg3[%c716, %c0_56] : memref<736x128xf32, #tpu.memory_space<vmem>>, vector<1x32xf32>
    %145 = vector.broadcast %144 : vector<1x32xf32> to vector<16x32xf32>
    %146 = arith.addf %143, %145 : vector<16x32xf32>
    %147 = arith.addf %146, %123 : vector<16x32xf32>
    %c717 = arith.constant 717 : index
    %c0_57 = arith.constant 0 : index
    %148 = vector.load %arg3[%c717, %c0_57] : memref<736x128xf32, #tpu.memory_space<vmem>>, vector<1x32xf32>
    %c718 = arith.constant 718 : index
    %c0_58 = arith.constant 0 : index
    %149 = vector.load %arg3[%c718, %c0_58] : memref<736x128xf32, #tpu.memory_space<vmem>>, vector<1x32xf32>
    %cst_59 = arith.constant dense<0.000000e+00> : vector<16xf32>
    %150 = vector.multi_reduction <add>, %147, %cst_59 [1] : vector<16x32xf32> to vector<16xf32>
    %151 = vector.shape_cast %150 : vector<16xf32> to vector<16x1xf32>
    %cst_60 = arith.constant 3.200000e+01 : f32
    %152 = vector.broadcast %cst_60 : f32 to vector<16x1xf32>
    %153 = arith.divf %151, %152 : vector<16x1xf32>
    %154 = vector.broadcast %153 : vector<16x1xf32> to vector<16x32xf32>
    %155 = arith.subf %147, %154 : vector<16x32xf32>
    %156 = arith.mulf %155, %155 : vector<16x32xf32>
    %cst_61 = arith.constant dense<0.000000e+00> : vector<16xf32>
    %157 = vector.multi_reduction <add>, %156, %cst_61 [1] : vector<16x32xf32> to vector<16xf32>
    %158 = vector.shape_cast %157 : vector<16xf32> to vector<16x1xf32>
    %cst_62 = arith.constant 3.200000e+01 : f32
    %159 = vector.broadcast %cst_62 : f32 to vector<16x1xf32>
    %160 = arith.divf %158, %159 : vector<16x1xf32>
    %cst_63 = arith.constant 9.99999974E-6 : f32
    %161 = vector.broadcast %cst_63 : f32 to vector<16x1xf32>
    %162 = arith.addf %160, %161 : vector<16x1xf32>
    %163 = math.rsqrt %162 : vector<16x1xf32>
    %164 = vector.broadcast %163 : vector<16x1xf32> to vector<16x32xf32>
    %165 = arith.mulf %155, %164 : vector<16x32xf32>
    %166 = vector.broadcast %148 : vector<1x32xf32> to vector<16x32xf32>
    %167 = arith.mulf %165, %166 : vector<16x32xf32>
    %168 = vector.broadcast %149 : vector<1x32xf32> to vector<16x32xf32>
    %169 = arith.addf %167, %168 : vector<16x32xf32>
    %c320 = arith.constant 320 : index
    %c0_64 = arith.constant 0 : index
    %170 = vector.load %arg3[%c320, %c0_64] : memref<736x128xf32, #tpu.memory_space<vmem>>, vector<32x16xf32>
    %c719 = arith.constant 719 : index
    %c0_65 = arith.constant 0 : index
    %171 = vector.load %arg3[%c719, %c0_65] : memref<736x128xf32, #tpu.memory_space<vmem>>, vector<1x16xf32>
    %cst_66 = arith.constant dense<0.000000e+00> : vector<16x16xf32>
    %172 = tpu.matmul %169, %170, %cst_66 {dimension_numbers = #tpu.dot_dimension_numbers<[1], [0], [0], [1], [0, 0, 1, 1], [], []>} : vector<16x32xf32>, vector<32x16xf32>, vector<16x16xf32> -> vector<16x16xf32>
    %173 = vector.broadcast %171 : vector<1x16xf32> to vector<16x16xf32>
    %174 = arith.addf %172, %173 : vector<16x16xf32>
    %c352 = arith.constant 352 : index
    %c0_67 = arith.constant 0 : index
    %175 = vector.load %arg3[%c352, %c0_67] : memref<736x128xf32, #tpu.memory_space<vmem>>, vector<32x16xf32>
    %c720 = arith.constant 720 : index
    %c0_68 = arith.constant 0 : index
    %176 = vector.load %arg3[%c720, %c0_68] : memref<736x128xf32, #tpu.memory_space<vmem>>, vector<1x16xf32>
    %cst_69 = arith.constant dense<0.000000e+00> : vector<16x16xf32>
    %177 = tpu.matmul %169, %175, %cst_69 {dimension_numbers = #tpu.dot_dimension_numbers<[1], [0], [0], [1], [0, 0, 1, 1], [], []>} : vector<16x32xf32>, vector<32x16xf32>, vector<16x16xf32> -> vector<16x16xf32>
    %178 = vector.broadcast %176 : vector<1x16xf32> to vector<16x16xf32>
    %179 = arith.addf %177, %178 : vector<16x16xf32>
    %180 = vector.shape_cast %174 : vector<16x16xf32> to vector<1x16x16xf32>
    %181 = vector.shape_cast %179 : vector<16x16xf32> to vector<1x16x16xf32>
    %182 = tpu.concatenate %180, %181 in 0 : vector<1x16x16xf32>, vector<1x16x16xf32> -> vector<2x16x16xf32>
    %183 = vector.shape_cast %182 : vector<2x16x16xf32> to vector<4x8x16xf32>
    %c384 = arith.constant 384 : index
    %c0_70 = arith.constant 0 : index
    %184 = vector.load %arg3[%c384, %c0_70] : memref<736x128xf32, #tpu.memory_space<vmem>>, vector<32x16xf32>
    %c721 = arith.constant 721 : index
    %c0_71 = arith.constant 0 : index
    %185 = vector.load %arg3[%c721, %c0_71] : memref<736x128xf32, #tpu.memory_space<vmem>>, vector<1x16xf32>
    %cst_72 = arith.constant dense<0.000000e+00> : vector<16x16xf32>
    %186 = tpu.matmul %169, %184, %cst_72 {dimension_numbers = #tpu.dot_dimension_numbers<[1], [0], [0], [1], [0, 0, 1, 1], [], []>} : vector<16x32xf32>, vector<32x16xf32>, vector<16x16xf32> -> vector<16x16xf32>
    %187 = vector.broadcast %185 : vector<1x16xf32> to vector<16x16xf32>
    %188 = arith.addf %186, %187 : vector<16x16xf32>
    %c416 = arith.constant 416 : index
    %c0_73 = arith.constant 0 : index
    %189 = vector.load %arg3[%c416, %c0_73] : memref<736x128xf32, #tpu.memory_space<vmem>>, vector<32x16xf32>
    %c722 = arith.constant 722 : index
    %c0_74 = arith.constant 0 : index
    %190 = vector.load %arg3[%c722, %c0_74] : memref<736x128xf32, #tpu.memory_space<vmem>>, vector<1x16xf32>
    %cst_75 = arith.constant dense<0.000000e+00> : vector<16x16xf32>
    %191 = tpu.matmul %169, %189, %cst_75 {dimension_numbers = #tpu.dot_dimension_numbers<[1], [0], [0], [1], [0, 0, 1, 1], [], []>} : vector<16x32xf32>, vector<32x16xf32>, vector<16x16xf32> -> vector<16x16xf32>
    %192 = vector.broadcast %190 : vector<1x16xf32> to vector<16x16xf32>
    %193 = arith.addf %191, %192 : vector<16x16xf32>
    %194 = vector.shape_cast %188 : vector<16x16xf32> to vector<1x16x16xf32>
    %195 = vector.shape_cast %193 : vector<16x16xf32> to vector<1x16x16xf32>
    %196 = tpu.concatenate %194, %195 in 0 : vector<1x16x16xf32>, vector<1x16x16xf32> -> vector<2x16x16xf32>
    %197 = vector.shape_cast %196 : vector<2x16x16xf32> to vector<4x8x16xf32>
    %c448 = arith.constant 448 : index
    %c0_76 = arith.constant 0 : index
    %198 = vector.load %arg3[%c448, %c0_76] : memref<736x128xf32, #tpu.memory_space<vmem>>, vector<32x16xf32>
    %c723 = arith.constant 723 : index
    %c0_77 = arith.constant 0 : index
    %199 = vector.load %arg3[%c723, %c0_77] : memref<736x128xf32, #tpu.memory_space<vmem>>, vector<1x16xf32>
    %cst_78 = arith.constant dense<0.000000e+00> : vector<16x16xf32>
    %200 = tpu.matmul %169, %198, %cst_78 {dimension_numbers = #tpu.dot_dimension_numbers<[1], [0], [0], [1], [0, 0, 1, 1], [], []>} : vector<16x32xf32>, vector<32x16xf32>, vector<16x16xf32> -> vector<16x16xf32>
    %201 = vector.broadcast %199 : vector<1x16xf32> to vector<16x16xf32>
    %202 = arith.addf %200, %201 : vector<16x16xf32>
    %c480 = arith.constant 480 : index
    %c0_79 = arith.constant 0 : index
    %203 = vector.load %arg3[%c480, %c0_79] : memref<736x128xf32, #tpu.memory_space<vmem>>, vector<32x16xf32>
    %c724 = arith.constant 724 : index
    %c0_80 = arith.constant 0 : index
    %204 = vector.load %arg3[%c724, %c0_80] : memref<736x128xf32, #tpu.memory_space<vmem>>, vector<1x16xf32>
    %cst_81 = arith.constant dense<0.000000e+00> : vector<16x16xf32>
    %205 = tpu.matmul %169, %203, %cst_81 {dimension_numbers = #tpu.dot_dimension_numbers<[1], [0], [0], [1], [0, 0, 1, 1], [], []>} : vector<16x32xf32>, vector<32x16xf32>, vector<16x16xf32> -> vector<16x16xf32>
    %206 = vector.broadcast %204 : vector<1x16xf32> to vector<16x16xf32>
    %207 = arith.addf %205, %206 : vector<16x16xf32>
    %208 = vector.shape_cast %202 : vector<16x16xf32> to vector<1x16x16xf32>
    %209 = vector.shape_cast %207 : vector<16x16xf32> to vector<1x16x16xf32>
    %210 = tpu.concatenate %208, %209 in 0 : vector<1x16x16xf32>, vector<1x16x16xf32> -> vector<2x16x16xf32>
    %211 = vector.shape_cast %210 : vector<2x16x16xf32> to vector<4x8x16xf32>
    "tpu.trace_start"() <{level = 10 : i32, message = "bqd,bkd->bqk"}> : () -> ()
    %cst_82 = arith.constant dense<0.000000e+00> : vector<4x8x8xf32>
    %212 = tpu.matmul %183, %197, %cst_82 {dimension_numbers = #tpu.dot_dimension_numbers<[2], [2], [1], [1], [0, 0, 0, 1, 1, 1], [0], [0]>} : vector<4x8x16xf32>, vector<4x8x16xf32>, vector<4x8x8xf32> -> vector<4x8x8xf32>
    "tpu.trace_stop"() : () -> ()
    %cst_83 = arith.constant 2.500000e-01 : f32
    %213 = vector.broadcast %cst_83 : f32 to vector<4x8x8xf32>
    %214 = arith.mulf %212, %213 : vector<4x8x8xf32>
    %215 = vector.broadcast %29 : vector<4x1x8xf32> to vector<4x8x8xf32>
    %216 = arith.addf %214, %215 : vector<4x8x8xf32>
    %cst_84 = arith.constant dense<0xFF800000> : vector<4x8xf32>
    %217 = vector.multi_reduction <maximumf>, %216, %cst_84 [2] : vector<4x8x8xf32> to vector<4x8xf32>
    %218 = vector.shape_cast %217 : vector<4x8xf32> to vector<4x8x1xf32>
    %219 = vector.broadcast %218 : vector<4x8x1xf32> to vector<4x8x8xf32>
    %220 = arith.subf %216, %219 : vector<4x8x8xf32>
    %221 = math.exp %220 : vector<4x8x8xf32>
    %cst_85 = arith.constant dense<0.000000e+00> : vector<4x8xf32>
    %222 = vector.multi_reduction <add>, %221, %cst_85 [2] : vector<4x8x8xf32> to vector<4x8xf32>
    %223 = vector.shape_cast %222 : vector<4x8xf32> to vector<4x8x1xf32>
    %224 = tpu.reciprocal %223 {approx = true} : vector<4x8x1xf32> -> vector<4x8x1xf32>
    %225 = vector.broadcast %224 : vector<4x8x1xf32> to vector<4x8x8xf32>
    %226 = arith.mulf %221, %225 : vector<4x8x8xf32>
    "tpu.trace_start"() <{level = 10 : i32, message = "bqk,bkd->bqd"}> : () -> ()
    %cst_86 = arith.constant dense<0.000000e+00> : vector<4x8x16xf32>
    %227 = tpu.matmul %226, %211, %cst_86 {dimension_numbers = #tpu.dot_dimension_numbers<[2], [1], [1], [2], [0, 0, 0, 1, 1, 2], [0], [0]>} : vector<4x8x8xf32>, vector<4x8x16xf32>, vector<4x8x16xf32> -> vector<4x8x16xf32>
    "tpu.trace_stop"() : () -> ()
    %228 = vector.shape_cast %227 : vector<4x8x16xf32> to vector<2x16x16xf32>
    %229 = vector.extract_strided_slice %228 {offsets = [0, 0, 0], sizes = [1, 16, 16], strides = [1, 1, 1]} : vector<2x16x16xf32> to vector<1x16x16xf32>
    %230 = vector.shape_cast %229 : vector<1x16x16xf32> to vector<16x16xf32>
    %c512 = arith.constant 512 : index
    %c0_87 = arith.constant 0 : index
    %231 = vector.load %arg3[%c512, %c0_87] : memref<736x128xf32, #tpu.memory_space<vmem>>, vector<16x32xf32>
    %cst_88 = arith.constant dense<0.000000e+00> : vector<16x32xf32>
    %232 = tpu.matmul %230, %231, %cst_88 {dimension_numbers = #tpu.dot_dimension_numbers<[1], [0], [0], [1], [0, 0, 1, 1], [], []>} : vector<16x16xf32>, vector<16x32xf32>, vector<16x32xf32> -> vector<16x32xf32>
    %233 = vector.extract_strided_slice %228 {offsets = [1, 0, 0], sizes = [1, 16, 16], strides = [1, 1, 1]} : vector<2x16x16xf32> to vector<1x16x16xf32>
    %234 = vector.shape_cast %233 : vector<1x16x16xf32> to vector<16x16xf32>
    %c528 = arith.constant 528 : index
    %c0_89 = arith.constant 0 : index
    %235 = vector.load %arg3[%c528, %c0_89] : memref<736x128xf32, #tpu.memory_space<vmem>>, vector<16x32xf32>
    %cst_90 = arith.constant dense<0.000000e+00> : vector<16x32xf32>
    %236 = tpu.matmul %234, %235, %cst_90 {dimension_numbers = #tpu.dot_dimension_numbers<[1], [0], [0], [1], [0, 0, 1, 1], [], []>} : vector<16x16xf32>, vector<16x32xf32>, vector<16x32xf32> -> vector<16x32xf32>
    %237 = arith.addf %232, %236 : vector<16x32xf32>
    %c725 = arith.constant 725 : index
    %c0_91 = arith.constant 0 : index
    %238 = vector.load %arg3[%c725, %c0_91] : memref<736x128xf32, #tpu.memory_space<vmem>>, vector<1x32xf32>
    %239 = vector.broadcast %238 : vector<1x32xf32> to vector<16x32xf32>
    %240 = arith.addf %237, %239 : vector<16x32xf32>
    %241 = arith.addf %240, %169 : vector<16x32xf32>
    %c726 = arith.constant 726 : index
    %c0_92 = arith.constant 0 : index
    %242 = vector.load %arg3[%c726, %c0_92] : memref<736x128xf32, #tpu.memory_space<vmem>>, vector<1x32xf32>
    %c727 = arith.constant 727 : index
    %c0_93 = arith.constant 0 : index
    %243 = vector.load %arg3[%c727, %c0_93] : memref<736x128xf32, #tpu.memory_space<vmem>>, vector<1x32xf32>
    %cst_94 = arith.constant dense<0.000000e+00> : vector<16xf32>
    %244 = vector.multi_reduction <add>, %241, %cst_94 [1] : vector<16x32xf32> to vector<16xf32>
    %245 = vector.shape_cast %244 : vector<16xf32> to vector<16x1xf32>
    %cst_95 = arith.constant 3.200000e+01 : f32
    %246 = vector.broadcast %cst_95 : f32 to vector<16x1xf32>
    %247 = arith.divf %245, %246 : vector<16x1xf32>
    %248 = vector.broadcast %247 : vector<16x1xf32> to vector<16x32xf32>
    %249 = arith.subf %241, %248 : vector<16x32xf32>
    %250 = arith.mulf %249, %249 : vector<16x32xf32>
    %cst_96 = arith.constant dense<0.000000e+00> : vector<16xf32>
    %251 = vector.multi_reduction <add>, %250, %cst_96 [1] : vector<16x32xf32> to vector<16xf32>
    %252 = vector.shape_cast %251 : vector<16xf32> to vector<16x1xf32>
    %cst_97 = arith.constant 3.200000e+01 : f32
    %253 = vector.broadcast %cst_97 : f32 to vector<16x1xf32>
    %254 = arith.divf %252, %253 : vector<16x1xf32>
    %cst_98 = arith.constant 9.99999974E-6 : f32
    %255 = vector.broadcast %cst_98 : f32 to vector<16x1xf32>
    %256 = arith.addf %254, %255 : vector<16x1xf32>
    %257 = math.rsqrt %256 : vector<16x1xf32>
    %258 = vector.broadcast %257 : vector<16x1xf32> to vector<16x32xf32>
    %259 = arith.mulf %249, %258 : vector<16x32xf32>
    %260 = vector.broadcast %242 : vector<1x32xf32> to vector<16x32xf32>
    %261 = arith.mulf %259, %260 : vector<16x32xf32>
    %262 = vector.broadcast %243 : vector<1x32xf32> to vector<16x32xf32>
    %263 = arith.addf %261, %262 : vector<16x32xf32>
    %c544 = arith.constant 544 : index
    %c0_99 = arith.constant 0 : index
    %264 = vector.load %arg3[%c544, %c0_99] : memref<736x128xf32, #tpu.memory_space<vmem>>, vector<32x64xf32>
    %cst_100 = arith.constant dense<0.000000e+00> : vector<16x64xf32>
    %265 = tpu.matmul %263, %264, %cst_100 {dimension_numbers = #tpu.dot_dimension_numbers<[1], [0], [0], [1], [0, 0, 1, 1], [], []>} : vector<16x32xf32>, vector<32x64xf32>, vector<16x64xf32> -> vector<16x64xf32>
    %c728 = arith.constant 728 : index
    %c0_101 = arith.constant 0 : index
    %266 = vector.load %arg3[%c728, %c0_101] : memref<736x128xf32, #tpu.memory_space<vmem>>, vector<1x64xf32>
    %267 = vector.broadcast %266 : vector<1x64xf32> to vector<16x64xf32>
    %268 = arith.addf %265, %267 : vector<16x64xf32>
    %269 = arith.mulf %268, %268 : vector<16x64xf32>
    %270 = arith.mulf %268, %269 : vector<16x64xf32>
    %cst_102 = arith.constant 4.471500e-02 : f32
    %271 = vector.broadcast %cst_102 : f32 to vector<16x64xf32>
    %272 = arith.mulf %271, %270 : vector<16x64xf32>
    %273 = arith.addf %268, %272 : vector<16x64xf32>
    %cst_103 = arith.constant 0.797884583 : f32
    %274 = vector.broadcast %cst_103 : f32 to vector<16x64xf32>
    %275 = arith.mulf %274, %273 : vector<16x64xf32>
    %276 = math.tanh %275 : vector<16x64xf32>
    %cst_104 = arith.constant 1.000000e+00 : f32
    %277 = vector.broadcast %cst_104 : f32 to vector<16x64xf32>
    %278 = arith.addf %277, %276 : vector<16x64xf32>
    %cst_105 = arith.constant 5.000000e-01 : f32
    %279 = vector.broadcast %cst_105 : f32 to vector<16x64xf32>
    %280 = arith.mulf %279, %278 : vector<16x64xf32>
    %281 = arith.mulf %268, %280 : vector<16x64xf32>
    %c576 = arith.constant 576 : index
    %c0_106 = arith.constant 0 : index
    %282 = vector.load %arg3[%c576, %c0_106] : memref<736x128xf32, #tpu.memory_space<vmem>>, vector<64x32xf32>
    %cst_107 = arith.constant dense<0.000000e+00> : vector<16x32xf32>
    %283 = tpu.matmul %281, %282, %cst_107 {dimension_numbers = #tpu.dot_dimension_numbers<[1], [0], [0], [1], [0, 0, 1, 1], [], []>} : vector<16x64xf32>, vector<64x32xf32>, vector<16x32xf32> -> vector<16x32xf32>
    %c729 = arith.constant 729 : index
    %c0_108 = arith.constant 0 : index
    %284 = vector.load %arg3[%c729, %c0_108] : memref<736x128xf32, #tpu.memory_space<vmem>>, vector<1x32xf32>
    %285 = vector.broadcast %284 : vector<1x32xf32> to vector<16x32xf32>
    %286 = arith.addf %283, %285 : vector<16x32xf32>
    %287 = arith.addf %286, %263 : vector<16x32xf32>
    %c730 = arith.constant 730 : index
    %c0_109 = arith.constant 0 : index
    %288 = vector.load %arg3[%c730, %c0_109] : memref<736x128xf32, #tpu.memory_space<vmem>>, vector<1x32xf32>
    %c731 = arith.constant 731 : index
    %c0_110 = arith.constant 0 : index
    %289 = vector.load %arg3[%c731, %c0_110] : memref<736x128xf32, #tpu.memory_space<vmem>>, vector<1x32xf32>
    %cst_111 = arith.constant dense<0.000000e+00> : vector<16xf32>
    %290 = vector.multi_reduction <add>, %287, %cst_111 [1] : vector<16x32xf32> to vector<16xf32>
    %291 = vector.shape_cast %290 : vector<16xf32> to vector<16x1xf32>
    %cst_112 = arith.constant 3.200000e+01 : f32
    %292 = vector.broadcast %cst_112 : f32 to vector<16x1xf32>
    %293 = arith.divf %291, %292 : vector<16x1xf32>
    %294 = vector.broadcast %293 : vector<16x1xf32> to vector<16x32xf32>
    %295 = arith.subf %287, %294 : vector<16x32xf32>
    %296 = arith.mulf %295, %295 : vector<16x32xf32>
    %cst_113 = arith.constant dense<0.000000e+00> : vector<16xf32>
    %297 = vector.multi_reduction <add>, %296, %cst_113 [1] : vector<16x32xf32> to vector<16xf32>
    %298 = vector.shape_cast %297 : vector<16xf32> to vector<16x1xf32>
    %cst_114 = arith.constant 3.200000e+01 : f32
    %299 = vector.broadcast %cst_114 : f32 to vector<16x1xf32>
    %300 = arith.divf %298, %299 : vector<16x1xf32>
    %cst_115 = arith.constant 9.99999974E-6 : f32
    %301 = vector.broadcast %cst_115 : f32 to vector<16x1xf32>
    %302 = arith.addf %300, %301 : vector<16x1xf32>
    %303 = math.rsqrt %302 : vector<16x1xf32>
    %304 = vector.broadcast %303 : vector<16x1xf32> to vector<16x32xf32>
    %305 = arith.mulf %295, %304 : vector<16x32xf32>
    %306 = vector.broadcast %288 : vector<1x32xf32> to vector<16x32xf32>
    %307 = arith.mulf %305, %306 : vector<16x32xf32>
    %308 = vector.broadcast %289 : vector<1x32xf32> to vector<16x32xf32>
    %309 = arith.addf %307, %308 : vector<16x32xf32>
    %310 = vector.shape_cast %309 : vector<16x32xf32> to vector<2x8x32xf32>
    %311 = vector.extract_strided_slice %310 {offsets = [0, 0, 0], sizes = [2, 1, 32], strides = [1, 1, 1]} : vector<2x8x32xf32> to vector<2x1x32xf32>
    %312 = vector.shape_cast %311 : vector<2x1x32xf32> to vector<2x32xf32>
    %c640 = arith.constant 640 : index
    %c0_116 = arith.constant 0 : index
    %313 = vector.load %arg3[%c640, %c0_116] : memref<736x128xf32, #tpu.memory_space<vmem>>, vector<32x32xf32>
    %cst_117 = arith.constant dense<0.000000e+00> : vector<2x32xf32>
    %314 = tpu.matmul %312, %313, %cst_117 {dimension_numbers = #tpu.dot_dimension_numbers<[1], [0], [0], [1], [0, 0, 1, 1], [], []>} : vector<2x32xf32>, vector<32x32xf32>, vector<2x32xf32> -> vector<2x32xf32>
    %c732 = arith.constant 732 : index
    %c0_118 = arith.constant 0 : index
    %315 = vector.load %arg3[%c732, %c0_118] : memref<736x128xf32, #tpu.memory_space<vmem>>, vector<1x32xf32>
    %316 = vector.broadcast %315 : vector<1x32xf32> to vector<2x32xf32>
    %317 = arith.addf %314, %316 : vector<2x32xf32>
    %318 = math.tanh %317 : vector<2x32xf32>
    %c672 = arith.constant 672 : index
    %c0_119 = arith.constant 0 : index
    %319 = vector.load %arg3[%c672, %c0_119] : memref<736x128xf32, #tpu.memory_space<vmem>>, vector<32x128xf32>
    %cst_120 = arith.constant dense<0.000000e+00> : vector<2x128xf32>
    %320 = tpu.matmul %318, %319, %cst_120 {dimension_numbers = #tpu.dot_dimension_numbers<[1], [0], [0], [1], [0, 0, 1, 1], [], []>} : vector<2x32xf32>, vector<32x128xf32>, vector<2x128xf32> -> vector<2x128xf32>
    %c733 = arith.constant 733 : index
    %c0_121 = arith.constant 0 : index
    %321 = vector.load %arg3[%c733, %c0_121] : memref<736x128xf32, #tpu.memory_space<vmem>>, vector<1x128xf32>
    %322 = vector.broadcast %321 : vector<1x128xf32> to vector<2x128xf32>
    %323 = arith.addf %320, %322 : vector<2x128xf32>
    %c0_122 = arith.constant 0 : index
    %c0_123 = arith.constant 0 : index
    %324 = vector.load %arg4[%c0_122, %c0_123] : memref<2x128xf32, #tpu.memory_space<vmem>>, vector<2x128xf32>
    tpu.vector_store %arg4[%c0_122, %c0_123], %323 {strides = array<i32>} : memref<2x128xf32, #tpu.memory_space<vmem>>, vector<2x128xf32>,
    return
  }
  func.func @transform_0(%arg0: i32) -> (i32, i32) {
    %c0_i32 = arith.constant 0 : i32
    %c0_i32_0 = arith.constant 0 : i32
    %c0_i32_1 = arith.constant 0 : i32
    return %c0_i32, %c0_i32_0 : i32, i32
  }
  func.func @transform_1(%arg0: i32) -> (i32, i32) {
    %c0_i32 = arith.constant 0 : i32
    %c0_i32_0 = arith.constant 0 : i32
    %c0_i32_1 = arith.constant 0 : i32
    return %c0_i32, %c0_i32_0 : i32, i32
  }
  func.func @transform_2(%arg0: i32) -> (i32, i32) {
    %c0_i32 = arith.constant 0 : i32
    %c0_i32_0 = arith.constant 0 : i32
    %c0_i32_1 = arith.constant 0 : i32
    return %c0_i32, %c0_i32_0 : i32, i32
  }
  func.func @transform_3(%arg0: i32) -> (i32, i32) {
    %c0_i32 = arith.constant 0 : i32
    %c0_i32_0 = arith.constant 0 : i32
    %c0_i32_1 = arith.constant 0 : i32
    return %c0_i32, %c0_i32_0 : i32, i32
  }
}

</mosaic_0001>

<bundles_post_ra>
// kernel: tpu_custom_call.1
= control target key start
LH: loop header
LB: loop body
LE: loop exit
PB: predicated region body
PF: predicated region fallthrough
CT: control target
= control target key end

     0   :  { %8 = vsyncpa [#allocation3], 0  ;;  %s4727_s0 = inlined_call_operand.hbm [shape: f32[16,32], index: 0, kind: input, shape index: {}]   ;;  %s4728_s1 = inlined_call_operand.vmem [shape: f32[2,8], index: 1, kind: input, shape index: {}]   ;;  %s4729_s2 = inlined_call_operand.hbm [shape: f32[736,128], index: 2, kind: input, shape index: {}]   ;;  %s4730_s3 = inlined_call_operand.hbm [shape: f32[2,128], index: 3, kind: output, shape index: {}]  }
   0x1   :  { %9 = vsyncpa [#allocation6], 0 }
   0x2   :  { %10 = vsyncpa [#allocation4], 0  ;;  %s4445_s12 = smov [#allocation2]   ;;  %s4373_s16 = scalar_lea.hbm %s4727_s0, 256 }
   0x3   :  { %s16_s13 = sshll.u32 %s4445_s12, 4  ;;  %p4374_p0 = scmp.ne.s32.totalorder %s4727_s0, %s4373_s16  ;;  %s17_s13 = int_to_ptr.vmem [resolvable:$true] %s16_s13 }
   0x4   :  { %p4377_p1 = scmp.lt.u32.totalorder %s4373_s16, %s4727_s0 }
   0x6   :  { %p4379_p2 = pnand %p4377_p1, %p4374_p0 }
   0x8   :  { %4382 = shalt.err (!%p4379_p2)
}
   0x9   :  { %s4383_s21 = scalar_lea.vmem %s17_s13, 256  ;;  %p4388_p4 = scmp.lt.s32.totalorder %s17_s13, %s17_s13 }
   0xa   :  { %p4384_p3 = scmp.ne.s32.totalorder %s17_s13, %s4383_s21  ;;  %p4389_p5 = scmp.lt.s32.totalorder %s4383_s21, %s4383_s21 }
   0xc   :  { %p4390_p6 = por %p4389_p5, %p4388_p4 }
   0xe   :  { %p4391_p7 = pnand %p4390_p6, %p4384_p3 }
  0x10   :  { %4394 = shalt.err (!%p4391_p7)
}
  0x11   :  { %s4446_s22 = smov 128   ;;  %s4447_s23 = smov 8  }
  0x12   :  { %22 = dma.hbm_to_vmem [thread:$0]  %s4727_s0, 256, %s17_s13, [#allocation3], %s4446_s22, %s4446_s22, %s4447_s23  }
  0x13   :  { %s4448_s26 = smov [#allocation5]   ;;  %s4395_s30 = scalar_lea.hbm %s4729_s2, 11776 }
  0x14   :  { %s30_s27 = sshll.u32 %s4448_s26, 4  ;;  %p4396_p8 = scmp.ne.s32.totalorder %s4729_s2, %s4395_s30  ;;  %s31_s27 = int_to_ptr.vmem [resolvable:$true] %s30_s27 }
  0x15   :  { %p4399_p9 = scmp.lt.u32.totalorder %s4395_s30, %s4729_s2 }
  0x17   :  { %p4401_p10 = pnand %p4399_p9, %p4396_p8 }
  0x19   :  { %4404 = shalt.err (!%p4401_p10)
}
  0x1a   :  { %s4405_s8 = scalar_lea.vmem %s31_s27, 11776  ;;  %p4410_p12 = scmp.lt.s32.totalorder %s31_s27, %s31_s27 }
  0x1b   :  { %p4406_p11 = scmp.ne.s32.totalorder %s31_s27, %s4405_s8  ;;  %p4411_p13 = scmp.lt.s32.totalorder %s4405_s8, %s4405_s8 }
  0x1d   :  { %p4412_p0 = por %p4411_p13, %p4410_p12 }
  0x1f   :  { %p4413_p1 = pnand %p4412_p0, %p4406_p11 }
  0x21   :  { %4416 = shalt.err (!%p4413_p1)
}
  0x22   :  { %36 = dma.hbm_to_vmem [thread:$0]  %s4729_s2, 11776, %s31_s27, [#allocation6], %s4446_s22, %s4446_s22, %s4447_s23  }
  0x23   :  { %4439 = dma.done.wait [#allocation3], 256  }
  0x24   :  { %4440 = vsyncadd [#allocation3], 4294967040 }
  0x25   :  { %4441 = dma.done.wait [#allocation6], 11776  }
  0x26   :  { %4442 = vsyncadd [#allocation6], 4294955520  ;;  %vm47_vm0 = vcmask 261120   ;;  %v43_v0 = vld [vmem:[#allocation2] sm:$0xff]  ;;  %v44_v1 = vld [vmem:[#allocation2 + $0x8] sm:$0xff]  ;;  %vm4450_vm1 = vmmov 0  }
  0x27   :  { %v48_v2 = vsel %vm47_vm0, %v43_v0, 0.0  ;;  %v51_v3 = vsel %vm47_vm0, %v44_v1, 0.0  ;;  %v113_v14 = vld [vmem:[#allocation5] sm:$0xff]  ;;  %v114_v15 = vld [vmem:[#allocation5 + $0x8] sm:$0xff]  ;;  %v115_v20 = vld [vmem:[#allocation5 + $0x10] sm:$0xff]  ;;  %vm623_vm2 = vcmask 130048  }
  0x28   :  { %49 = vadd.xlane.f32.xlu0 %v48_v2  ;;  %v203_v16 = vld [vmem:[#allocation5 + $0x20] sm:$0xff]  ;;  %v4126_v17 = vpack.c.bf16 %v114_v15, %v113_v14  ;;  %v204_v18 = vld [vmem:[#allocation5 + $0x28] sm:$0xff]  ;;  %v116_v21 = vld [vmem:[#allocation5 + $0x18] sm:$0xff]  ;;  %v4449_v2 = vmov 0.0   ;;  %vm946_vm3 = vcmask 64512   ;;  %vm1619_vm4 = vcmask 523264  }
  0x29   :  { %v4134_v19 = vpack.c.bf16 %v204_v18, %v203_v16  ;;  %v205_v22 = vld [vmem:[#allocation5 + $0x30] sm:$0xff]  ;;  %v4130_v23 = vpack.c.bf16 %v116_v21, %v115_v20  ;;  %v206_v24 = vld [vmem:[#allocation5 + $0x38] sm:$0xff]  ;;  %v287_v26 = vld [vmem:[#allocation5 + $0x40] sm:$0xff]  ;;  %vm3372_vm5 = vcmask 1041409  }
  0x2a   :  { %4127 = vmatprep.subr.bf16.mxu0 %v4126_v17  ;;  %v4138_v25 = vpack.c.bf16 %v206_v24, %v205_v22  ;;  %v288_v27 = vld [vmem:[#allocation5 + $0x48] sm:$0xff]  ;;  %v371_v28 = vld [vmem:[#allocation5 + $0x60] sm:$0xff]  ;;  %v289_v46 = vld [vmem:[#allocation5 + $0x50] sm:$0xff] }
  0x2b   :  { %4135 = vmatprep.subr.bf16.mxu1 %v4134_v19  ;;  %4129 = vmatpush3.bf16.msra.mxu0 %v4126_v17  ;;  %v4142_v29 = vpack.c.bf16 %v288_v27, %v287_v26  ;;  %v372_v30 = vld [vmem:[#allocation5 + $0x68] sm:$0xff]  ;;  %v3546_v39 = vld [vmem:[#allocation5 + $0x2c0] ss:$0 sm:$0xff]  ;;  %v3547_v41 = vld [vmem:[#allocation5 + $0x2c1] ss:$0 sm:$0xff] }
  0x2c   :  { %52 = vadd.xlane.f32.xlu0 %v51_v3  ;;  %4137 = vmatpush3.bf16.msra.mxu1 %v4134_v19  ;;  %v4150_v31 = vpack.c.bf16 %v372_v30, %v371_v28  ;;  %v290_v48 = vld [vmem:[#allocation5 + $0x58] sm:$0xff]  ;;  %v373_v49 = vld [vmem:[#allocation5 + $0x70] sm:$0xff]  ;;  %v455_v52 = vld [vmem:[#allocation5 + $0x80] sm:$0xff]  ;;  %v4451_v30 = vmov 1966171168  }
  0x2d   :  { %4131 = vmatprep.subr.bf16.mxu0 %v4130_v23  ;;  %4139 = vmatprep.subr.bf16.mxu1 %v4138_v25  ;;  %v374_v50 = vld [vmem:[#allocation5 + $0x78] sm:$0xff]  ;;  %v4146_v53 = vpack.c.bf16 %v290_v48, %v289_v46  ;;  %v456_v55 = vld [vmem:[#allocation5 + $0x88] sm:$0xff]  ;;  %v539_v56 = vld [vmem:[#allocation5 + $0xa0] sm:$0xff] }
  0x2e   :  { %v4154_v54 = vpack.c.bf16 %v374_v50, %v373_v49  ;;  %v540_v57 = vld [vmem:[#allocation5 + $0xa8] sm:$0xff]  ;;  %v4158_v58 = vpack.c.bf16 %v456_v55, %v455_v52  ;;  %v457_v60 = vld [vmem:[#allocation5 + $0x90] sm:$0xff]  ;;  %v458_v61 = vld [vmem:[#allocation5 + $0x98] sm:$0xff] }
  0x2f   :  { %4133 = vmatpush3.bf16.msra.mxu0 %v4130_v23  ;;  %v4166_v59 = vpack.c.bf16 %v540_v57, %v539_v56  ;;  %v541_v62 = vld [vmem:[#allocation5 + $0xb0] sm:$0xff]  ;;  %v542_v63 = vld [vmem:[#allocation5 + $0xb8] sm:$0xff]  ;;  %v3557_v14 = vld [vmem:[#allocation5 + $0x2c5] ss:$0 sm:$0xff] }
  0x30   :  { %4141 = vmatpush3.bf16.msra.mxu1 %v4138_v25  ;;  %4143 = vmatprep.subr.bf16.mxu0 %v4142_v29  ;;  %v3551_v17 = vld [vmem:[#allocation5 + $0x2c3] ss:$0 sm:$0xff]  ;;  %v3560_v21 = vld [vmem:[#allocation5 + $0x2c6] ss:$0 sm:$0xff] }
  0x31   :  { %4151 = vmatprep.subr.bf16.mxu1 %v4150_v31 }
  0xb5   :  { %v50_v4 = vpop.xlane.xlu0 %49 }
  0xb6   :  { %v55_v5 = vmul.f32 0.03125, %v50_v4 }
  0xb8   :  { %v57_v6 = vsub.f32 %v43_v0, %v55_v5  ;;  %v4162_v0 = vpack.c.bf16 %v458_v61, %v457_v60 }
  0xb9   :  { %v53_v7 = vpop.xlane.xlu0 %52 }
  0xba   :  { %v56_v8 = vmul.f32 0.03125, %v53_v7  ;;  %v59_v9 = vmul.f32 %v57_v6, %v57_v6  ;;  %v3554_v7 = vld [vmem:[#allocation5 + $0x2c4] ss:$0 sm:$0xff] }
  0xbc   :  { %v58_v10 = vsub.f32 %v44_v1, %v56_v8  ;;  %v61_v11 = vsel %vm47_vm0, %v59_v9, 0.0  ;;  %v4170_v1 = vpack.c.bf16 %v542_v63, %v541_v62 }
  0xbd   :  { %62 = vadd.xlane.f32.xlu1 %v61_v11 }
  0xbe   :  { %v60_v12 = vmul.f32 %v58_v10, %v58_v10 }
  0xc0   :  { %v64_v13 = vsel %vm47_vm0, %v60_v12, 0.0 }
  0xc1   :  { %65 = vadd.xlane.f32.xlu1 %v64_v13 }
 0x14a   :  { %v63_v32 = vpop.xlane.xlu1 %62 }
 0x14b   :  { %v67_v33 = vmul.f32 0.03125, %v63_v32  ;;  %v94_v32 = vlaneseq }
 0x14d   :  { %v69_v34 = vadd.f32 1e-05, %v67_v33  ;;  %v87_v33 = vld [vmem:[%s4728_s1] sm:$0x3]  ;;  %s4453_s1 = smov [#allocation7]  }
 0x14e   :  { %v66_v35 = vpop.xlane.xlu1 %65  ;;  %s3536_s11 = sshll.u32 %s4453_s1, 4  ;;  %s3537_s11 = int_to_ptr.vmem [resolvable:$true] %s3536_s11 }
 0x14f   :  { %4311 = vrsqrt.f32 %v69_v34  ;;  %v68_v36 = vmul.f32 0.03125, %v66_v35  ;;  %v88_v34 = vsub.f32 1.0, %v87_v33  ;;  %s4417_s12 = scalar_lea.vmem %s3537_s11, 32  ;;  %p4422_p3 = scmp.lt.s32.totalorder %s3537_s11, %s3537_s11 }
 0x150   :  { %p4418_p2 = scmp.ne.s32.totalorder %s3537_s11, %s4417_s12  ;;  %p4423_p4 = scmp.lt.s32.totalorder %s4417_s12, %s4417_s12 }
 0x151   :  { %v70_v37 = vadd.f32 1e-05, %v68_v36  ;;  %v95_v36 = vshrl.u32 %v94_v32, 7 }
 0x152   :  { %p4424_p5 = por %p4423_p4, %p4422_p3 }
 0x153   :  { %4313 = vrsqrt.f32 %v70_v37  ;;  %v89_v37 = vmul.f32 -1e+09, %v88_v34 }
 0x154   :  { %p4425_p6 = pnand %p4424_p5, %p4418_p2 }
 0x159   :  { %v4312_v38 = vpop.eup %4311 }
 0x15a   :  { %v73_v40 = vmul.f32 %v4312_v38, %v57_v6 }
 0x15c   :  { %v79_v42 = vmul.f32 %v3546_v39, %v73_v40 }
 0x15d   :  { %v4314_v43 = vpop.eup %4313 }
 0x15e   :  { %v4502_v44 = vadd.f32 %v3547_v41, %v79_v42  ;;  %v74_v45 = vmul.f32 %v4314_v43, %v58_v10  ;;  %v3548_v10 = vld [vmem:[#allocation5 + $0x2c2] ss:$0 sm:$0xff]  ;;  %v934_v42 = vsub.s32 0, %v95_v36 }
 0x160   :  { %v80_v47 = vmul.f32 %v3546_v39, %v74_v45  ;;  %3812 = vmatprep.mubr.msk.f32.mxu0 %vm47_vm0, %v4502_v44  ;;  %3823 = vmatprep.mubr.msk.f32.mxu1 %vm47_vm0, %v4502_v44 }
 0x162   :  { %v4508_v51 = vadd.f32 %v3547_v41, %v80_v47 }
 0x164   :  { %3813 = vmatmul.mubr.msk.f32.vlgmr.msra.gmra.mrb[0].mxu0 %vm47_vm0, %v4508_v51  ;;  %3824 = vmatmul.mubr.msk.f32.vlgmr.msra.gmra.mrb[0].mxu1 %vm47_vm0, %v4508_v51 }
 0x165   :  { %4145 = vmatpush3.bf16.msra.mxu0 %v4142_v29  ;;  %4153 = vmatpush3.bf16.msra.mxu1 %v4150_v31  ;;  %v92_v31 = vunpack.c.l.s4 %v4451_v30 }
 0x166   :  { %3834 = vmatprep.mubr.msk.f32.mxu0 %vm47_vm0, %v4502_v44  ;;  %3845 = vmatprep.mubr.msk.f32.mxu1 %vm47_vm0, %v4502_v44 }
 0x167   :  { %4147 = vmatprep.subr.bf16.mxu0 %v4146_v53  ;;  %4155 = vmatprep.subr.bf16.mxu1 %v4154_v54  ;;  %v93_v35 = vunpack.c.0.s8 %v92_v31  ;;  %v3563_v31 = vld [vmem:[#allocation5 + $0x2c7] ss:$0 sm:$0xff] }
 0x169   :  { %4149 = vmatpush3.bf16.msra.mxu0 %v4146_v53  ;;  %4157 = vmatpush3.bf16.msra.mxu1 %v4154_v54  ;;  %v96_v38 = vsub.s32 %v93_v35, %v95_v36 }
 0x16a   :  { %4159 = vmatprep.subr.bf16.mxu0 %v4158_v58  ;;  %4167 = vmatprep.subr.bf16.mxu1 %v4166_v59 }
 0x16b   :  { %v97_v39 = vrot.slane %v89_v37, %v96_v38 }
 0x16c   :  { %3835 = vmatmul.mubr.msk.f32.vlgmr.msra.gmra.mrb[2].mxu0 %vm47_vm0, %v4508_v51  ;;  %3846 = vmatmul.mubr.msk.f32.vlgmr.msra.gmra.mrb[2].mxu1 %vm47_vm0, %v4508_v51 }
 0x16d   :  { %4161 = vmatpush3.bf16.msra.mxu0 %v4158_v58  ;;  %3856 = vmatprep.mubr.msk.f32.mxu0 %vm47_vm0, %v4502_v44  ;;  %v98_v40 = vcombine.high %v97_v39, %v97_v39  ;;  %v105_v43 = vrot.slane %v97_v39, %v96_v38 }
 0x16e   :  { %4169 = vmatpush3.bf16.msra.mxu1 %v4166_v59  ;;  %3867 = vmatprep.mubr.msk.f32.mxu1 %vm47_vm0, %v4502_v44 }
 0x16f   :  { %4163 = vmatprep.subr.bf16.mxu0 %v4162_v0  ;;  %4171 = vmatprep.subr.bf16.mxu1 %v4170_v1  ;;  %v112_v41 = vrot.slane %v98_v40, %v96_v38  ;;  %v4567_v47 = vrot.slane %v105_v43, %v934_v42  ;;  %v1283_v43 = vld [vmem:[#allocation5 + $0xc0] sm:$0xff] }
 0x171   :  { %4165 = vmatpush3.bf16.msra.mxu0 %v4162_v0  ;;  %v4565_v45 = vrot.slane %v112_v41, %v934_v42 }
 0x172   :  { %4173 = vmatpush3.bf16.msra.mxu1 %v4170_v1  ;;  %3870 = vmatprep.subr.mxu0 %v4449_v2 }
 0x173   :  { %3875 = vmatprep.subr.mxu1 %v4449_v2 }
 0x174   :  { %3857 = vmatmul.mubr.msk.f32.vlgmr.msra.gmra.mrb[4].mxu0 %vm47_vm0, %v4508_v51 }
 0x175   :  { %3868 = vmatmul.mubr.msk.f32.vlgmr.msra.gmra.mrb[4].mxu1 %vm47_vm0, %v4508_v51  ;;  %3872 = vmatprep.mubr.msk.f32.mxu0 %vm4450_vm1, %v4449_v2 }
 0x176   :  { %3877 = vmatprep.mubr.msk.f32.mxu1 %vm4450_vm1, %v4449_v2 }
 0x237   :  { %v3814_v3 = vpop.f32.mrb[0].mxu0  ;;  %v3825_v4 = vpop.f32.mrb[0].mxu1 }
 0x238   :  { %v194_v5 = vpop.f32.mrb[1].mxu0  ;;  %v278_v6 = vpop.f32.mrb[1].mxu1  ;;  %v200_v16 = vadd.f32 %v3814_v3, %v3548_v10  ;;  %v284_v22 = vadd.f32 %v3825_v4, %v3551_v17 }
 0x239   :  { %v195_v18 = vadd.f32 %v3548_v10, %v194_v5  ;;  %v279_v24 = vadd.f32 %v3551_v17, %v278_v6 }
 0x23f   :  { %v3836_v8 = vpop.f32.mrb[2].mxu0  ;;  %v3847_v9 = vpop.f32.mrb[2].mxu1 }
 0x240   :  { %v368_v11 = vadd.f32 %v3836_v8, %v3554_v7  ;;  %v362_v12 = vpop.f32.mrb[3].mxu0  ;;  %v446_v13 = vpop.f32.mrb[3].mxu1  ;;  %v452_v19 = vadd.f32 %v3847_v9, %v3557_v14 }
 0x241   :  { %v363_v15 = vadd.f32 %v3554_v7, %v362_v12  ;;  %v447_v20 = vadd.f32 %v3557_v14, %v446_v13 }
 0x242   :  { %3876 = vmatpush3.xpose.msk.msra.mxu1 %vm623_vm2, %v368_v11 }
 0x243   :  { %3871 = vmatpush3.xpose.msk.msra.mxu0 %vm623_vm2, %v363_v15  ;;  %3885 = vmatprep.subr.mxu1 %v4449_v2 }
 0x244   :  { %3880 = vmatprep.subr.mxu0 %v4449_v2 }
 0x245   :  { %3878 = vmatmul.mubr.msk.f32.vlgmr.msra.gmra.mrb[6].mxu1 %vm623_vm2, %v200_v16 }
 0x246   :  { %3873 = vmatmul.mubr.msk.f32.vlgmr.msra.gmra.mrb[6].mxu0 %vm623_vm2, %v195_v18  ;;  %3886 = vmatpush3.xpose.msk.msra.mxu1 %vm623_vm2, %v452_v19 }
 0x247   :  { %v3858_v23 = vpop.f32.mrb[4].mxu0  ;;  %3881 = vmatpush3.xpose.msk.msra.mxu0 %vm623_vm2, %v447_v20  ;;  %3887 = vmatprep.mubr.msk.f32.mxu1 %vm4450_vm1, %v4449_v2 }
 0x248   :  { %v536_v25 = vadd.f32 %v3858_v23, %v3560_v21  ;;  %v4546_v26 = vpop.f32.mrb[4].mxu1  ;;  %v530_v27 = vpop.f32.mrb[5].mxu0  ;;  %3882 = vmatprep.mubr.msk.f32.mxu0 %vm4450_vm1, %v4449_v2  ;;  %3895 = vmatprep.subr.mxu1 %v4449_v2 }
 0x249   :  { %v531_v28 = vadd.f32 %v3560_v21, %v530_v27  ;;  %v4551_v29 = vpop.f32.mrb[5].mxu1  ;;  %3888 = vmatmul.mubr.msk.f32.vlgmr.msra.gmra.mrb[8].mxu1 %vm623_vm2, %v284_v22  ;;  %3890 = vmatprep.subr.mxu0 %v4449_v2  ;;  %v620_v35 = vadd.f32 %v4546_v26, %v3563_v31  ;;  %v1285_v26 = vld [vmem:[#allocation5 + $0xd0] sm:$0xff] }
 0x24a   :  { %3883 = vmatmul.mubr.msk.f32.vlgmr.msra.gmra.mrb[8].mxu0 %vm623_vm2, %v279_v24  ;;  %3896 = vmatpush3.msra.mxu1 %v536_v25  ;;  %v615_v37 = vadd.f32 %v3563_v31, %v4551_v29  ;;  %v1286_v29 = vld [vmem:[#allocation5 + $0xd8] sm:$0xff]  ;;  %v3584_v31 = vld [vmem:[#allocation5 + $0x2ca] ss:$0 sm:$0xff] }
 0x24b   :  { %3891 = vmatpush3.msra.mxu0 %v531_v28  ;;  %3897 = vmatprep.mubr.msk.f32.mxu1 %vm4450_vm1, %v4449_v2  ;;  %v4174_v42 = vpack.c.bf16 %v1286_v29, %v1285_v26  ;;  %v1610_v26 = vld [vmem:[#allocation5 + $0x120] sm:$0xff]  ;;  %v1611_v29 = vld [vmem:[#allocation5 + $0x128] sm:$0xff] }
 0x24c   :  { %3905 = vmatprep.subr.mxu1 %v4449_v2  ;;  %3892 = vmatprep.mubr.msk.f32.mxu0 %vm4450_vm1, %v4449_v2 }
 0x24d   :  { %3900 = vmatprep.subr.mxu0 %v4449_v2 }
 0x318   :  { %v772_v46 = vpop.f32.mrb[6].mxu1 }
 0x319   :  { %v929_v48 = vmul.f32 0.25, %v772_v46  ;;  %v696_v49 = vpop.f32.mrb[6].mxu0  ;;  %v3879_v50 = vpop.f32.mrb[7].mxu1  ;;  %v1284_v46 = vld [vmem:[#allocation5 + $0xc8] sm:$0xff] }
 0x31a   :  { %v928_v52 = vmul.f32 0.25, %v696_v49  ;;  %v3874_v53 = vpop.f32.mrb[7].mxu0 }
 0x31b   :  { %v943_v54 = vadd.f32 %v4565_v45, %v929_v48  ;;  %v4178_v48 = vpack.c.bf16 %v1284_v46, %v1283_v43  ;;  %v1612_v43 = vld [vmem:[#allocation5 + $0x130] sm:$0xff]  ;;  %v1613_v46 = vld [vmem:[#allocation5 + $0x138] sm:$0xff] }
 0x31c   :  { %v924_v55 = vpop.f32.mrb[8].mxu1  ;;  %v942_v56 = vadd.f32 %v4567_v47, %v928_v52 }
 0x31d   :  { %v931_v57 = vmul.f32 0.25, %v924_v55  ;;  %v848_v58 = vpop.f32.mrb[8].mxu0  ;;  %v3889_v59 = vpop.f32.mrb[9].mxu1  ;;  %v950_v60 = vsel %vm946_vm3, %v943_v54, -inf }
 0x31e   :  { %v930_v61 = vmul.f32 0.25, %v848_v58  ;;  %951 = vmax.xlane.f32.xlu1 %v950_v60  ;;  %v3884_v62 = vpop.f32.mrb[9].mxu0  ;;  %v947_v63 = vsel %vm946_vm3, %v942_v56, -inf  ;;  %v3582_v58 = vld [vmem:[#allocation5 + $0x2c8] ss:$0 sm:$0xff] }
 0x31f   :  { %948 = vmax.xlane.f32.xlu0 %v947_v63  ;;  %v945_v0 = vadd.f32 %v4565_v45, %v931_v57 }
 0x320   :  { %v944_v1 = vadd.f32 %v4567_v47, %v930_v61 }
 0x321   :  { %v956_v3 = vsel %vm946_vm3, %v945_v0, -inf }
 0x322   :  { %957 = vmax.xlane.f32.xlu1 %v956_v3  ;;  %v953_v4 = vsel %vm946_vm3, %v944_v1, -inf }
 0x323   :  { %954 = vmax.xlane.f32.xlu0 %v953_v4 }
 0x3ab   :  { %v952_v5 = vpop.xlane.xlu1 %951 }
 0x3ac   :  { %v960_v6 = vsub.f32 %v943_v54, %v952_v5  ;;  %v949_v7 = vpop.xlane.xlu0 %948 }
 0x3ad   :  { %v959_v8 = vsub.f32 %v942_v56, %v949_v7 }
 0x3ae   :  { %v965_v9 = vmul.f32 1.442695, %v960_v6 }
 0x3af   :  { %v963_v10 = vmul.f32 1.442695, %v959_v8  ;;  %v958_v11 = vpop.xlane.xlu1 %957 }
 0x3b0   :  { %4315 = vpow2.f32 %v965_v9  ;;  %v962_v12 = vsub.f32 %v945_v0, %v958_v11  ;;  %v955_v13 = vpop.xlane.xlu0 %954 }
 0x3b1   :  { %4317 = vpow2.f32 %v963_v10  ;;  %v961_v14 = vsub.f32 %v944_v1, %v955_v13  ;;  %v1499_v13 = vld [vmem:[#allocation5 + $0xe8] sm:$0xff] }
 0x3b2   :  { %v969_v15 = vmul.f32 1.442695, %v962_v12 }
 0x3b3   :  { %v967_v16 = vmul.f32 1.442695, %v961_v14 }
 0x3b4   :  { %4319 = vpow2.f32 %v969_v15  ;;  %v1500_v15 = vld [vmem:[#allocation5 + $0xf0] sm:$0xff] }
 0x3b5   :  { %4321 = vpow2.f32 %v967_v16  ;;  %v1501_v16 = vld [vmem:[#allocation5 + $0xf8] sm:$0xff] }
 0x3ba   :  { %v4316_v17 = vpop.eup %4315 }
 0x3bb   :  { %v4318_v18 = vpop.eup %4317  ;;  %v974_v19 = vsel %vm946_vm3, %v4316_v17, 0.0 }
 0x3bc   :  { %975 = vadd.xlane.f32.xlu1 %v974_v19  ;;  %v971_v20 = vsel %vm946_vm3, %v4318_v18, 0.0 }
 0x3bd   :  { %972 = vadd.xlane.f32.xlu0 %v971_v20 }
 0x3be   :  { %v4320_v21 = vpop.eup %4319 }
 0x3bf   :  { %v4322_v22 = vpop.eup %4321  ;;  %v980_v23 = vsel %vm946_vm3, %v4320_v21, 0.0 }
 0x3c0   :  { %981 = vadd.xlane.f32.xlu1 %v980_v23  ;;  %v977_v24 = vsel %vm946_vm3, %v4322_v22, 0.0 }
 0x3c1   :  { %978 = vadd.xlane.f32.xlu0 %v977_v24 }
 0x449   :  { %v976_v25 = vpop.xlane.xlu1 %975 }
 0x44a   :  { %4323 = vrcp.f32 %v976_v25  ;;  %v973_v27 = vpop.xlane.xlu0 %972  ;;  %v3583_v25 = vld [vmem:[#allocation5 + $0x2c9] ss:$0 sm:$0xff] }
 0x44b   :  { %4325 = vrcp.f32 %v973_v27 }
 0x44d   :  { %v982_v28 = vpop.xlane.xlu1 %981 }
 0x44e   :  { %4327 = vrcp.f32 %v982_v28  ;;  %v979_v30 = vpop.xlane.xlu0 %978 }
 0x44f   :  { %4329 = vrcp.f32 %v979_v30 }
 0x454   :  { %v4324_v32 = vpop.eup %4323 }
 0x455   :  { %v4326_v33 = vpop.eup %4325  ;;  %v988_v34 = vmul.f32 %v4324_v32, %v4316_v17  ;;  %v4186_v17 = vpack.c.bf16 %v1501_v16, %v1500_v15 }
 0x456   :  { %v987_v36 = vmul.f32 %v4326_v33, %v4318_v18 }
 0x457   :  { %3898 = vmatmul.mubr.msk.f32.vlgmr.msra.gmra.mrb[10].mxu1 %vm946_vm3, %v988_v34 }
 0x458   :  { %v4328_v38 = vpop.eup %4327  ;;  %3906 = vmatpush3.msra.mxu1 %v620_v35  ;;  %3893 = vmatmul.mubr.msk.f32.vlgmr.msra.gmra.mrb[10].mxu0 %vm946_vm3, %v987_v36  ;;  %v1606_v36 = vld [vmem:[#allocation5 + $0x100] sm:$0xff] }
 0x459   :  { %v4330_v39 = vpop.eup %4329  ;;  %v990_v40 = vmul.f32 %v4328_v38, %v4320_v21  ;;  %3901 = vmatpush3.msra.mxu0 %v615_v37  ;;  %3907 = vmatprep.mubr.msk.f32.mxu1 %vm4450_vm1, %v4449_v2  ;;  %v1607_v37 = vld [vmem:[#allocation5 + $0x108] sm:$0xff] }
 0x45a   :  { %v989_v41 = vmul.f32 %v4330_v39, %v4322_v22  ;;  %3902 = vmatprep.mubr.msk.f32.mxu0 %vm4450_vm1, %v4449_v2  ;;  %4175 = vmatprep.subr.bf16.mxu0 %v4174_v42  ;;  %v4190_v38 = vpack.c.bf16 %v1607_v37, %v1606_v36  ;;  %v1608_v39 = vld [vmem:[#allocation5 + $0x110] sm:$0xff]  ;;  %v1746_v36 = vld [vmem:[#allocation5 + $0x158] sm:$0xff] }
 0x45b   :  { %3908 = vmatmul.mubr.msk.f32.vlgmr.msra.gmra.mrb[12].mxu1 %vm946_vm3, %v990_v40  ;;  %v1609_v40 = vld [vmem:[#allocation5 + $0x118] sm:$0xff]  ;;  %v1919_v37 = vld [vmem:[#allocation5 + $0x190] sm:$0xff] }
 0x45c   :  { %3903 = vmatmul.mubr.msk.f32.vlgmr.msra.gmra.mrb[12].mxu0 %vm946_vm3, %v989_v41  ;;  %v4194_v41 = vpack.c.bf16 %v1609_v40, %v1608_v39  ;;  %v1920_v39 = vld [vmem:[#allocation5 + $0x198] sm:$0xff] }
 0x45d   :  { %4177 = vmatpush3.bf16.msra.mxu0 %v4174_v42  ;;  %v4198_v42 = vpack.c.bf16 %v1611_v29, %v1610_v26  ;;  %v4226_v40 = vpack.c.bf16 %v1920_v39, %v1919_v37  ;;  %v1834_v26 = vld [vmem:[#allocation5 + $0x168] sm:$0xff]  ;;  %v2085_v29 = vld [vmem:[#allocation5 + $0x1c0] sm:$0xff]  ;;  %v3605_v39 = vld [vmem:[#allocation5 + $0x2d3] ss:$0 sm:$0xff] }
 0x45e   :  { %4179 = vmatprep.subr.bf16.mxu0 %v4178_v48 }
 0x52a   :  { %v1133_v49 = vpop.f32.mrb[10].mxu1 }
 0x52b   :  { %v1060_v50 = vpop.f32.mrb[10].mxu0  ;;  %v3899_v52 = vpop.f32.mrb[11].mxu1 }
 0x52c   :  { %v3894_v53 = vpop.f32.mrb[11].mxu0 }
 0x52e   :  { %v1279_v54 = vpop.f32.mrb[12].mxu1 }
 0x52f   :  { %v1206_v55 = vpop.f32.mrb[12].mxu0  ;;  %v3909_v56 = vpop.f32.mrb[13].mxu1 }
 0x530   :  { %v3904_v57 = vpop.f32.mrb[13].mxu0  ;;  %3914 = vmatprep.mubr.msk.f32.mxu0 %vm623_vm2, %v1206_v55 }
 0x531   :  { %3915 = vmatmul.mubr.msk.f32.vlgmr.msra.gmra.mrb[14].mxu0 %vm623_vm2, %v1279_v54 }
 0x532   :  { %4181 = vmatpush3.bf16.msra.mxu0 %v4178_v48  ;;  %3921 = vmatprep.mubr.msk.f32.mxu0 %vm623_vm2, %v1060_v50  ;;  %v4202_v48 = vpack.c.bf16 %v1613_v46, %v1612_v43  ;;  %v2086_v43 = vld [vmem:[#allocation5 + $0x1c8] sm:$0xff] }
 0x533   :  { %4191 = vmatprep.subr.bf16.mxu0 %v4190_v38  ;;  %v4238_v46 = vpack.c.bf16 %v2086_v43, %v2085_v29 }
 0x539   :  { %3922 = vmatmul.mubr.msk.f32.vlgmr.msra.gmra.mrb[14].mxu0 %vm623_vm2, %v1133_v49  ;;  %v3585_v49 = vld [vmem:[#allocation5 + $0x2cb] ss:$0 sm:$0xff] }
 0x53a   :  { %4193 = vmatpush3.bf16.msra.mxu0 %v4190_v38 }
 0x53b   :  { %4195 = vmatprep.subr.bf16.mxu0 %v4194_v41 }
 0x53e   :  { %4197 = vmatpush3.bf16.msra.mxu0 %v4194_v41  ;;  %v1833_v41 = vld [vmem:[#allocation5 + $0x160] sm:$0xff] }
 0x53f   :  { %4199 = vmatprep.subr.bf16.mxu0 %v4198_v42 }
 0x542   :  { %4201 = vmatpush3.bf16.msra.mxu0 %v4198_v42  ;;  %v4214_v42 = vpack.c.bf16 %v1834_v26, %v1833_v41 }
 0x543   :  { %4203 = vmatprep.subr.bf16.mxu0 %v4202_v48 }
 0x546   :  { %4205 = vmatpush3.bf16.msra.mxu0 %v4202_v48 }
 0x60c   :  { %v3923_v59 = vpop.f32.mrb[14].mxu0 }
 0x60d   :  { %v1455_v60 = vadd.f32 %v3923_v59, %v3582_v58  ;;  %v1440_v61 = vpop.f32.mrb[15].mxu0 }
 0x60e   :  { %v1454_v62 = vadd.f32 %v3582_v58, %v1440_v61 }
 0x60f   :  { %v1457_v63 = vadd.f32 %v1455_v60, %v4508_v51 }
 0x610   :  { %v1456_v0 = vadd.f32 %v1454_v62, %v4502_v44  ;;  %v1498_v44 = vld [vmem:[#allocation5 + $0xe0] sm:$0xff] }
 0x611   :  { %v1463_v1 = vsel %vm47_vm0, %v1457_v63, 0.0  ;;  %v4182_v14 = vpack.c.bf16 %v1499_v13, %v1498_v44 }
 0x612   :  { %1464 = vadd.xlane.f32.xlu1 %v1463_v1  ;;  %v1460_v3 = vsel %vm47_vm0, %v1456_v0, 0.0 }
 0x613   :  { %1461 = vadd.xlane.f32.xlu0 %v1460_v3  ;;  %4183 = vmatprep.subr.bf16.mxu1 %v4182_v14 }
 0x614   :  { %4185 = vmatpush3.bf16.msra.mxu1 %v4182_v14 }
 0x615   :  { %4187 = vmatprep.subr.bf16.mxu1 %v4186_v17 }
 0x618   :  { %4189 = vmatpush3.bf16.msra.mxu1 %v4186_v17 }
 0x69f   :  { %v1465_v4 = vpop.xlane.xlu1 %1464 }
 0x6a0   :  { %v1467_v5 = vmul.f32 0.03125, %v1465_v4  ;;  %v1462_v6 = vpop.xlane.xlu0 %1461 }
 0x6a1   :  { %v1466_v7 = vmul.f32 0.03125, %v1462_v6 }
 0x6a2   :  { %v1469_v8 = vsub.f32 %v1457_v63, %v1467_v5 }
 0x6a3   :  { %v1468_v9 = vsub.f32 %v1456_v0, %v1466_v7 }
 0x6a4   :  { %v1471_v10 = vmul.f32 %v1469_v8, %v1469_v8 }
 0x6a5   :  { %v1470_v11 = vmul.f32 %v1468_v9, %v1468_v9 }
 0x6a6   :  { %v1475_v12 = vsel %vm47_vm0, %v1471_v10, 0.0  ;;  %v3588_v10 = vld [vmem:[#allocation5 + $0x2cc] ss:$0 sm:$0xff] }
 0x6a7   :  { %1476 = vadd.xlane.f32.xlu1 %v1475_v12  ;;  %v1472_v51 = vsel %vm47_vm0, %v1470_v11, 0.0 }
 0x6a8   :  { %1473 = vadd.xlane.f32.xlu0 %v1472_v51 }
 0x734   :  { %v1477_v18 = vpop.xlane.xlu1 %1476 }
 0x735   :  { %v1479_v19 = vmul.f32 0.03125, %v1477_v18  ;;  %v1474_v20 = vpop.xlane.xlu0 %1473 }
 0x736   :  { %v1478_v21 = vmul.f32 0.03125, %v1474_v20 }
 0x737   :  { %v1481_v22 = vadd.f32 1e-05, %v1479_v19 }
 0x738   :  { %v1480_v23 = vadd.f32 1e-05, %v1478_v21 }
 0x739   :  { %4331 = vrsqrt.f32 %v1481_v22 }
 0x73a   :  { %4333 = vrsqrt.f32 %v1480_v23 }
 0x743   :  { %v4332_v24 = vpop.eup %4331 }
 0x744   :  { %v4334_v27 = vpop.eup %4333  ;;  %v1485_v28 = vmul.f32 %v4332_v24, %v1469_v8 }
 0x745   :  { %v1484_v30 = vmul.f32 %v4334_v27, %v1468_v9 }
 0x746   :  { %v1491_v32 = vmul.f32 %v3583_v25, %v1485_v28  ;;  %v1743_v28 = vld [vmem:[#allocation5 + $0x140] sm:$0xff] }
 0x747   :  { %v1490_v33 = vmul.f32 %v3583_v25, %v1484_v30  ;;  %v1744_v30 = vld [vmem:[#allocation5 + $0x148] sm:$0xff] }
 0x748   :  { %v1497_v35 = vadd.f32 %v3584_v31, %v1491_v32  ;;  %v4206_v32 = vpack.c.bf16 %v1744_v30, %v1743_v28 }
 0x749   :  { %v1496_v34 = vadd.f32 %v3584_v31, %v1490_v33  ;;  %v1917_v31 = vld [vmem:[#allocation5 + $0x180] sm:$0xff]  ;;  %v1918_v33 = vld [vmem:[#allocation5 + $0x188] sm:$0xff] }
 0x74a   :  { %4207 = vmatprep.subr.bf16.mxu1 %v4206_v32 }
 0x74b   :  { %3932 = vmatprep.mubr.msk.f32.mxu1 %vm47_vm0, %v1496_v34 }
 0x74c   :  { %3933 = vmatmul.mubr.msk.f32.vlgmr.msra.gmra.mrb[14].mxu1 %vm47_vm0, %v1497_v35 }
 0x74d   :  { %4209 = vmatpush3.bf16.msra.mxu1 %v4206_v32 }
 0x81f   :  { %v3934_v50 = vpop.f32.mrb[14].mxu1 }
 0x820   :  { %v1585_v52 = vadd.f32 %v3934_v50, %v3585_v49  ;;  %v1579_v53 = vpop.f32.mrb[15].mxu1 }
 0x821   :  { %v1580_v54 = vadd.f32 %v3585_v49, %v1579_v53 }
 0x822   :  { %v1589_v55 = vmul.f32 %v1585_v52, %v1585_v52 }
 0x823   :  { %v1588_v56 = vmul.f32 %v1580_v54, %v1580_v54 }
 0x824   :  { %v1591_v57 = vmul.f32 %v1589_v55, %v1585_v52 }
 0x825   :  { %v1590_v58 = vmul.f32 %v1588_v56, %v1580_v54  ;;  %v3591_v56 = vld [vmem:[#allocation5 + $0x2cd] ss:$0 sm:$0xff] }
 0x826   :  { %v1593_v59 = vmul.f32 0.044715, %v1591_v57 }
 0x827   :  { %v1592_v60 = vmul.f32 0.044715, %v1590_v58 }
 0x828   :  { %v1595_v61 = vadd.f32 %v1593_v59, %v1585_v52 }
 0x829   :  { %v1594_v62 = vadd.f32 %v1592_v60, %v1580_v54  ;;  %v3592_v60 = vld [vmem:[#allocation5 + $0x2ce] ss:$0 sm:$0xff] }
 0x82a   :  { %v1597_v63 = vmul.f32 0.7978846, %v1595_v61 }
 0x82b   :  { %v1596_v0 = vmul.f32 0.7978846, %v1594_v62 }
 0x82c   :  { %4335 = vtanh.f32 %v1597_v63  ;;  %v1835_v63 = vld [vmem:[#allocation5 + $0x170] sm:$0xff] }
 0x82d   :  { %4337 = vtanh.f32 %v1596_v0  ;;  %v1836_v0 = vld [vmem:[#allocation5 + $0x178] sm:$0xff] }
 0x836   :  { %v4336_v1 = vpop.eup %4335 }
 0x837   :  { %v4338_v3 = vpop.eup %4337  ;;  %v1601_v4 = vadd.f32 1.0, %v4336_v1  ;;  %v2087_v1 = vld [vmem:[#allocation5 + $0x1d0] sm:$0xff] }
 0x838   :  { %v1600_v5 = vadd.f32 1.0, %v4338_v3  ;;  %v2088_v3 = vld [vmem:[#allocation5 + $0x1d8] sm:$0xff] }
 0x839   :  { %v1603_v6 = vmul.f32 0.5, %v1601_v4 }
 0x83a   :  { %v1602_v7 = vmul.f32 0.5, %v1600_v5 }
 0x83b   :  { %v1605_v9 = vmul.f32 %v1603_v6, %v1585_v52  ;;  %v4218_v6 = vpack.c.bf16 %v1836_v0, %v1835_v63 }
 0x83c   :  { %v1604_v8 = vmul.f32 %v1602_v7, %v1580_v54  ;;  %v4242_v7 = vpack.c.bf16 %v2088_v3, %v2087_v1 }
 0x83e   :  { %3951 = vmatprep.mubr.msk.f32.mxu0 %vm1619_vm4, %v1604_v8  ;;  %v2001_v8 = vld [vmem:[#allocation5 + $0x1a0] sm:$0xff] }
 0x83f   :  { %3952 = vmatmul.mubr.msk.f32.vlgmr.msra.gmra.mrb[16].mxu0 %vm1619_vm4, %v1605_v9  ;;  %v2002_v9 = vld [vmem:[#allocation5 + $0x1a8] sm:$0xff] }
 0x912   :  { %v3953_v11 = vpop.f32.mrb[16].mxu0 }
 0x913   :  { %v1698_v12 = vadd.f32 %v3953_v11, %v3588_v10  ;;  %v1692_v51 = vpop.f32.mrb[17].mxu0  ;;  %v2003_v11 = vld [vmem:[#allocation5 + $0x1b0] sm:$0xff] }
 0x914   :  { %v1693_v44 = vadd.f32 %v3588_v10, %v1692_v51  ;;  %v4230_v10 = vpack.c.bf16 %v2002_v9, %v2001_v8 }
 0x915   :  { %v1702_v13 = vadd.f32 %v1698_v12, %v1497_v35  ;;  %v1745_v35 = vld [vmem:[#allocation5 + $0x150] sm:$0xff]  ;;  %v2004_v12 = vld [vmem:[#allocation5 + $0x1b8] sm:$0xff] }
 0x916   :  { %v1701_v14 = vadd.f32 %v1693_v44, %v1496_v34  ;;  %v4222_v34 = vpack.c.bf16 %v1918_v33, %v1917_v31  ;;  %v4210_v38 = vpack.c.bf16 %v1746_v36, %v1745_v35  ;;  %v4234_v51 = vpack.c.bf16 %v2004_v12, %v2003_v11  ;;  %v2169_v44 = vld [vmem:[#allocation5 + $0x1e0] sm:$0xff]  ;;  %v3596_v36 = vld [vmem:[#allocation5 + $0x2d0] ss:$0 sm:$0xff] }
 0x917   :  { %v1708_v15 = vsel %vm47_vm0, %v1702_v13, 0.0 }
 0x918   :  { %1709 = vadd.xlane.f32.xlu1 %v1708_v15  ;;  %v1705_v16 = vsel %vm47_vm0, %v1701_v14, 0.0  ;;  %4223 = vmatprep.subr.bf16.mxu0 %v4222_v34  ;;  %v2171_v15 = vld [vmem:[#allocation5 + $0x1f0] sm:$0xff] }
 0x919   :  { %1706 = vadd.xlane.f32.xlu0 %v1705_v16  ;;  %4225 = vmatpush3.bf16.msra.mxu0 %v4222_v34  ;;  %v2172_v16 = vld [vmem:[#allocation5 + $0x1f8] sm:$0xff]  ;;  %v3602_v34 = vld [vmem:[#allocation5 + $0x2d2] ss:$0 sm:$0xff] }
 0x91a   :  { %4211 = vmatprep.subr.bf16.mxu1 %v4210_v38  ;;  %4227 = vmatprep.subr.bf16.mxu0 %v4226_v40 }
 0x91b   :  { %4213 = vmatpush3.bf16.msra.mxu1 %v4210_v38 }
 0x91c   :  { %4215 = vmatprep.subr.bf16.mxu1 %v4214_v42 }
 0x91d   :  { %4229 = vmatpush3.bf16.msra.mxu0 %v4226_v40 }
 0x91e   :  { %4239 = vmatprep.subr.bf16.mxu0 %v4238_v46 }
 0x9a5   :  { %v1710_v17 = vpop.xlane.xlu1 %1709 }
 0x9a6   :  { %v1712_v18 = vmul.f32 0.03125, %v1710_v17  ;;  %v1707_v19 = vpop.xlane.xlu0 %1706  ;;  %v4250_v17 = vpack.c.bf16 %v2172_v16, %v2171_v15 }
 0x9a7   :  { %v1711_v20 = vmul.f32 0.03125, %v1707_v19 }
 0x9a8   :  { %v1714_v21 = vsub.f32 %v1702_v13, %v1712_v18  ;;  %v2170_v13 = vld [vmem:[#allocation5 + $0x1e8] sm:$0xff]  ;;  %v3599_v18 = vld [vmem:[#allocation5 + $0x2d1] ss:$0 sm:$0xff] }
 0x9a9   :  { %v1713_v22 = vsub.f32 %v1701_v14, %v1711_v20  ;;  %v4246_v14 = vpack.c.bf16 %v2170_v13, %v2169_v44 }
 0x9aa   :  { %v1716_v23 = vmul.f32 %v1714_v21, %v1714_v21 }
 0x9ab   :  { %v1715_v24 = vmul.f32 %v1713_v22, %v1713_v22 }
 0x9ac   :  { %v1720_v25 = vsel %vm47_vm0, %v1716_v23, 0.0 }
 0x9ad   :  { %1721 = vadd.xlane.f32.xlu1 %v1720_v25  ;;  %v1717_v27 = vsel %vm47_vm0, %v1715_v24, 0.0 }
 0x9ae   :  { %1718 = vadd.xlane.f32.xlu0 %v1717_v27 }
 0xa3a   :  { %v1722_v48 = vpop.xlane.xlu1 %1721 }
 0xa3b   :  { %v1724_v49 = vmul.f32 0.03125, %v1722_v48  ;;  %v1719_v50 = vpop.xlane.xlu0 %1718 }
 0xa3c   :  { %v1723_v52 = vmul.f32 0.03125, %v1719_v50 }
 0xa3d   :  { %v1726_v53 = vadd.f32 1e-05, %v1724_v49 }
 0xa3e   :  { %v1725_v54 = vadd.f32 1e-05, %v1723_v52 }
 0xa3f   :  { %4339 = vrsqrt.f32 %v1726_v53 }
 0xa40   :  { %4341 = vrsqrt.f32 %v1725_v54 }
 0xa49   :  { %v4340_v55 = vpop.eup %4339 }
 0xa4a   :  { %v4342_v57 = vpop.eup %4341  ;;  %v1730_v58 = vmul.f32 %v4340_v55, %v1714_v21  ;;  %v3593_v21 = vld [vmem:[#allocation5 + $0x2cf] ss:$0 sm:$0xff] }
 0xa4b   :  { %v1729_v59 = vmul.f32 %v4342_v57, %v1713_v22 }
 0xa4c   :  { %v1736_v61 = vmul.f32 %v3591_v56, %v1730_v58 }
 0xa4d   :  { %v1735_v62 = vmul.f32 %v3591_v56, %v1729_v59 }
 0xa4e   :  { %v4611_v5 = vadd.f32 %v3592_v60, %v1736_v61 }
 0xa4f   :  { %v4609_v4 = vadd.f32 %v3592_v60, %v1735_v62 }
 0xa51   :  { %3962 = vmatprep.mubr.msk.f32.mxu1 %vm47_vm0, %v4609_v4  ;;  %3984 = vmatprep.mubr.msk.f32.mxu0 %vm47_vm0, %v4609_v4 }
 0xa52   :  { %3963 = vmatmul.mubr.msk.f32.vlgmr.msra.gmra.mrb[16].mxu1 %vm47_vm0, %v4611_v5  ;;  %3985 = vmatmul.mubr.msk.f32.vlgmr.msra.gmra.mrb[18].mxu0 %vm47_vm0, %v4611_v5 }
 0xa53   :  { %4217 = vmatpush3.bf16.msra.mxu1 %v4214_v42  ;;  %4241 = vmatpush3.bf16.msra.mxu0 %v4238_v46 }
 0xa54   :  { %3973 = vmatprep.mubr.msk.f32.mxu1 %vm47_vm0, %v4609_v4  ;;  %4006 = vmatprep.mubr.msk.f32.mxu0 %vm47_vm0, %v4609_v4 }
 0xa55   :  { %4219 = vmatprep.subr.bf16.mxu1 %v4218_v6  ;;  %4243 = vmatprep.subr.bf16.mxu0 %v4242_v7 }
 0xa57   :  { %4221 = vmatpush3.bf16.msra.mxu1 %v4218_v6  ;;  %4245 = vmatpush3.bf16.msra.mxu0 %v4242_v7 }
 0xa58   :  { %4231 = vmatprep.subr.bf16.mxu1 %v4230_v10  ;;  %4020 = vmatprep.subr.mxu0 %v4449_v2 }
 0xa5a   :  { %3974 = vmatmul.mubr.msk.f32.vlgmr.msra.gmra.mrb[18].mxu1 %vm47_vm0, %v4611_v5  ;;  %4007 = vmatmul.mubr.msk.f32.vlgmr.msra.gmra.mrb[20].mxu0 %vm47_vm0, %v4611_v5 }
 0xa5b   :  { %4233 = vmatpush3.bf16.msra.mxu1 %v4230_v10  ;;  %3995 = vmatprep.mubr.msk.f32.mxu1 %vm47_vm0, %v4609_v4 }
 0xa5c   :  { %4235 = vmatprep.subr.bf16.mxu1 %v4234_v51  ;;  %4022 = vmatprep.mubr.msk.f32.mxu0 %vm4450_vm1, %v4449_v2 }
 0xa5f   :  { %4237 = vmatpush3.bf16.msra.mxu1 %v4234_v51 }
 0xa60   :  { %4247 = vmatprep.subr.bf16.mxu1 %v4246_v14 }
 0xa62   :  { %3996 = vmatmul.mubr.msk.f32.vlgmr.msra.gmra.mrb[20].mxu1 %vm47_vm0, %v4611_v5 }
 0xa63   :  { %4249 = vmatpush3.bf16.msra.mxu1 %v4246_v14  ;;  %4017 = vmatprep.mubr.msk.f32.mxu1 %vm47_vm0, %v4609_v4 }
 0xa64   :  { %4251 = vmatprep.subr.bf16.mxu1 %v4250_v17 }
 0xa67   :  { %4253 = vmatpush3.bf16.msra.mxu1 %v4250_v17 }
 0xa68   :  { %4025 = vmatprep.subr.mxu1 %v4449_v2 }
 0xa6a   :  { %4018 = vmatmul.mubr.msk.f32.vlgmr.msra.gmra.mrb[22].mxu1 %vm47_vm0, %v4611_v5 }
 0xa6b   :  { %4027 = vmatprep.mubr.msk.f32.mxu1 %vm4450_vm1, %v4449_v2 }
 0xb25   :  { %v3964_v19 = vpop.f32.mrb[16].mxu1  ;;  %v3986_v20 = vpop.f32.mrb[18].mxu0 }
 0xb26   :  { %v1998_v22 = vadd.f32 %v3986_v20, %v3599_v18  ;;  %v1824_v23 = vpop.f32.mrb[17].mxu1  ;;  %v1992_v24 = vpop.f32.mrb[19].mxu0  ;;  %v1830_v27 = vadd.f32 %v3964_v19, %v3593_v21 }
 0xb27   :  { %v1993_v25 = vadd.f32 %v3599_v18, %v1992_v24  ;;  %v1825_v28 = vadd.f32 %v3593_v21, %v1824_v23 }
 0xb28   :  { %4026 = vmatpush3.xpose.msk.msra.mxu1 %vm623_vm2, %v1998_v22 }
 0xb29   :  { %4021 = vmatpush3.xpose.msk.msra.mxu0 %vm623_vm2, %v1993_v25  ;;  %4035 = vmatprep.subr.mxu1 %v4449_v2 }
 0xb2a   :  { %4030 = vmatprep.subr.mxu0 %v4449_v2 }
 0xb2b   :  { %4028 = vmatmul.mubr.msk.f32.vlgmr.msra.gmra.mrb[24].mxu1 %vm623_vm2, %v1830_v27  ;;  %v3608_v27 = vld [vmem:[#allocation5 + $0x2d4] ss:$0 sm:$0xff] }
 0xb2c   :  { %4023 = vmatmul.mubr.msk.f32.vlgmr.msra.gmra.mrb[22].mxu0 %vm623_vm2, %v1825_v28  ;;  %4037 = vmatprep.mubr.msk.f32.mxu1 %vm4450_vm1, %v4449_v2 }
 0xb2d   :  { %v3975_v30 = vpop.f32.mrb[18].mxu1  ;;  %v4008_v31 = vpop.f32.mrb[20].mxu0  ;;  %4032 = vmatprep.mubr.msk.f32.mxu0 %vm4450_vm1, %v4449_v2 }
 0xb2e   :  { %v1908_v32 = vpop.f32.mrb[19].mxu1  ;;  %v2160_v33 = vpop.f32.mrb[21].mxu0  ;;  %v1914_v41 = vadd.f32 %v3975_v30, %v3596_v36  ;;  %v2166_v26 = vadd.f32 %v4008_v31, %v3605_v39 }
 0xb2f   :  { %v1909_v29 = vadd.f32 %v3596_v36, %v1908_v32  ;;  %v2161_v42 = vadd.f32 %v3605_v39, %v2160_v33 }
 0xb35   :  { %v3997_v35 = vpop.f32.mrb[20].mxu1 }
 0xb36   :  { %v2082_v37 = vadd.f32 %v3997_v35, %v3602_v34  ;;  %v2076_v38 = vpop.f32.mrb[21].mxu1 }
 0xb37   :  { %v2077_v40 = vadd.f32 %v3602_v34, %v2076_v38 }
 0xb38   :  { %4036 = vmatpush3.xpose.msk.msra.mxu1 %vm623_vm2, %v2082_v37 }
 0xb39   :  { %4031 = vmatpush3.xpose.msk.msra.mxu0 %vm623_vm2, %v2077_v40  ;;  %4045 = vmatprep.subr.mxu1 %v4449_v2 }
 0xb3a   :  { %4040 = vmatprep.subr.mxu0 %v4449_v2 }
 0xb3b   :  { %4038 = vmatmul.mubr.msk.f32.vlgmr.msra.gmra.mrb[26].mxu1 %vm623_vm2, %v1914_v41  ;;  %v2903_v41 = vld [vmem:[#allocation5 + $0x210] sm:$0xff] }
 0xb3c   :  { %4033 = vmatmul.mubr.msk.f32.vlgmr.msra.gmra.mrb[24].mxu0 %vm623_vm2, %v1909_v29  ;;  %4046 = vmatpush3.msra.mxu1 %v2166_v26  ;;  %v2904_v26 = vld [vmem:[#allocation5 + $0x218] sm:$0xff] }
 0xb3d   :  { %v4659_v43 = vpop.f32.mrb[22].mxu1  ;;  %4041 = vmatpush3.msra.mxu0 %v2161_v42  ;;  %4047 = vmatprep.mubr.msk.f32.mxu1 %vm4450_vm1, %v4449_v2  ;;  %v4254_v29 = vpack.c.bf16 %v2904_v26, %v2903_v41  ;;  %v2901_v42 = vld [vmem:[#allocation5 + $0x200] sm:$0xff]  ;;  %v3230_v26 = vld [vmem:[#allocation5 + $0x270] sm:$0xff] }
 0xb3e   :  { %v4663_v46 = vpop.f32.mrb[23].mxu1  ;;  %4055 = vmatprep.subr.mxu1 %v4449_v2  ;;  %4042 = vmatprep.mubr.msk.f32.mxu0 %vm4450_vm1, %v4449_v2  ;;  %v2250_v32 = vadd.f32 %v4659_v43, %v3608_v27  ;;  %v2902_v43 = vld [vmem:[#allocation5 + $0x208] sm:$0xff] }
 0xb3f   :  { %4050 = vmatprep.subr.mxu0 %v4449_v2  ;;  %v2245_v34 = vadd.f32 %v3608_v27, %v4663_v46  ;;  %v4258_v46 = vpack.c.bf16 %v2902_v43, %v2901_v42  ;;  %v3629_v27 = vld [vmem:[#allocation5 + $0x2d7] ss:$0 sm:$0xff]  ;;  %v3630_v43 = vld [vmem:[#allocation5 + $0x2d8] ss:$0 sm:$0xff] }
 0xbfe   :  { %v2401_v48 = vpop.f32.mrb[24].mxu1 }
 0xbff   :  { %v2558_v49 = vmul.f32 0.25, %v2401_v48  ;;  %v2325_v50 = vpop.f32.mrb[22].mxu0  ;;  %v4029_v52 = vpop.f32.mrb[25].mxu1 }
 0xc00   :  { %v2557_v53 = vmul.f32 0.25, %v2325_v50  ;;  %v4024_v54 = vpop.f32.mrb[23].mxu0 }
 0xc01   :  { %v2562_v55 = vadd.f32 %v2558_v49, %v4565_v45 }
 0xc02   :  { %v2561_v56 = vadd.f32 %v2557_v53, %v4567_v47 }
 0xc03   :  { %v2568_v57 = vsel %vm946_vm3, %v2562_v55, -inf }
 0xc04   :  { %2569 = vmax.xlane.f32.xlu1 %v2568_v57  ;;  %v2565_v58 = vsel %vm946_vm3, %v2561_v56, -inf  ;;  %v3627_v57 = vld [vmem:[#allocation5 + $0x2d5] ss:$0 sm:$0xff] }
 0xc05   :  { %2566 = vmax.xlane.f32.xlu0 %v2565_v58 }
 0xc0e   :  { %v2553_v59 = vpop.f32.mrb[26].mxu1 }
 0xc0f   :  { %v2560_v60 = vmul.f32 0.25, %v2553_v59  ;;  %v2477_v61 = vpop.f32.mrb[24].mxu0  ;;  %v4039_v62 = vpop.f32.mrb[27].mxu1 }
 0xc10   :  { %v2559_v63 = vmul.f32 0.25, %v2477_v61  ;;  %v4034_v0 = vpop.f32.mrb[25].mxu0 }
 0xc11   :  { %v2564_v1 = vadd.f32 %v2560_v60, %v4565_v45 }
 0xc12   :  { %v2563_v3 = vadd.f32 %v2559_v63, %v4567_v47 }
 0xc13   :  { %v2574_v6 = vsel %vm946_vm3, %v2564_v1, -inf }
 0xc14   :  { %2575 = vmax.xlane.f32.xlu1 %v2574_v6  ;;  %v2571_v7 = vsel %vm946_vm3, %v2563_v3, -inf }
 0xc15   :  { %2572 = vmax.xlane.f32.xlu0 %v2571_v7 }
 0xc91   :  { %v2570_v8 = vpop.xlane.xlu1 %2569 }
 0xc92   :  { %v2578_v9 = vsub.f32 %v2562_v55, %v2570_v8  ;;  %v2567_v10 = vpop.xlane.xlu0 %2566 }
 0xc93   :  { %v2577_v11 = vsub.f32 %v2561_v56, %v2567_v10 }
 0xc94   :  { %v2583_v12 = vmul.f32 1.442695, %v2578_v9 }
 0xc95   :  { %v2581_v51 = vmul.f32 1.442695, %v2577_v11 }
 0xc96   :  { %4343 = vpow2.f32 %v2583_v12 }
 0xc97   :  { %4345 = vpow2.f32 %v2581_v51 }
 0xca0   :  { %v4344_v44 = vpop.eup %4343 }
 0xca1   :  { %v4346_v13 = vpop.eup %4345  ;;  %v2576_v14 = vpop.xlane.xlu1 %2575  ;;  %v2592_v45 = vsel %vm946_vm3, %v4344_v44, 0.0 }
 0xca2   :  { %v2580_v47 = vsub.f32 %v2564_v1, %v2576_v14  ;;  %v2573_v15 = vpop.xlane.xlu0 %2572  ;;  %2593 = vadd.xlane.f32.xlu1 %v2592_v45  ;;  %v2589_v16 = vsel %vm946_vm3, %v4346_v13, 0.0  ;;  %v3118_v14 = vld [vmem:[#allocation5 + $0x230] sm:$0xff]  ;;  %v3119_v45 = vld [vmem:[#allocation5 + $0x238] sm:$0xff] }
 0xca3   :  { %v2579_v17 = vsub.f32 %v2563_v3, %v2573_v15  ;;  %2590 = vadd.xlane.f32.xlu0 %v2589_v16 }
 0xca4   :  { %v2587_v18 = vmul.f32 1.442695, %v2580_v47  ;;  %v4266_v47 = vpack.c.bf16 %v3119_v45, %v3118_v14 }
 0xca5   :  { %v2585_v19 = vmul.f32 1.442695, %v2579_v17 }
 0xca6   :  { %4347 = vpow2.f32 %v2587_v18 }
 0xca7   :  { %4349 = vpow2.f32 %v2585_v19 }
 0xcb0   :  { %v4348_v20 = vpop.eup %4347 }
 0xcb1   :  { %v4350_v21 = vpop.eup %4349  ;;  %v2598_v22 = vsel %vm946_vm3, %v4348_v20, 0.0 }
 0xcb2   :  { %2599 = vadd.xlane.f32.xlu1 %v2598_v22  ;;  %v2595_v23 = vsel %vm946_vm3, %v4350_v21, 0.0  ;;  %v3628_v22 = vld [vmem:[#allocation5 + $0x2d6] ss:$0 sm:$0xff] }
 0xcb3   :  { %2596 = vadd.xlane.f32.xlu0 %v2595_v23 }
 0xd2f   :  { %v2594_v24 = vpop.xlane.xlu1 %2593 }
 0xd30   :  { %4351 = vrcp.f32 %v2594_v24  ;;  %v2591_v25 = vpop.xlane.xlu0 %2590 }
 0xd31   :  { %4353 = vrcp.f32 %v2591_v25 }
 0xd3a   :  { %v4352_v28 = vpop.eup %4351 }
 0xd3b   :  { %v4354_v30 = vpop.eup %4353  ;;  %v2606_v31 = vmul.f32 %v4352_v28, %v4344_v44  ;;  %v3117_v44 = vld [vmem:[#allocation5 + $0x228] sm:$0xff] }
 0xd3c   :  { %v2605_v33 = vmul.f32 %v4354_v30, %v4346_v13 }
 0xd3d   :  { %4048 = vmatmul.mubr.msk.f32.vlgmr.msra.gmra.mrb[28].mxu1 %vm946_vm3, %v2606_v31 }
 0xd3e   :  { %4056 = vmatpush3.msra.mxu1 %v2250_v32  ;;  %4043 = vmatmul.mubr.msk.f32.vlgmr.msra.gmra.mrb[26].mxu0 %vm946_vm3, %v2605_v33  ;;  %v3224_v33 = vld [vmem:[#allocation5 + $0x240] sm:$0xff] }
 0xd3f   :  { %v2600_v35 = vpop.xlane.xlu1 %2599  ;;  %4051 = vmatpush3.msra.mxu0 %v2245_v34  ;;  %4057 = vmatprep.mubr.msk.f32.mxu1 %vm4450_vm1, %v4449_v2  ;;  %v3225_v34 = vld [vmem:[#allocation5 + $0x248] sm:$0xff] }
 0xd40   :  { %4355 = vrcp.f32 %v2600_v35  ;;  %v2597_v36 = vpop.xlane.xlu0 %2596  ;;  %4052 = vmatprep.mubr.msk.f32.mxu0 %vm4450_vm1, %v4449_v2  ;;  %4255 = vmatprep.subr.bf16.mxu0 %v4254_v29  ;;  %v4270_v35 = vpack.c.bf16 %v3225_v34, %v3224_v33 }
 0xd41   :  { %4357 = vrcp.f32 %v2597_v36  ;;  %v3226_v36 = vld [vmem:[#allocation5 + $0x250] sm:$0xff] }
 0xd4a   :  { %v4356_v37 = vpop.eup %4355 }
 0xd4b   :  { %v4358_v38 = vpop.eup %4357  ;;  %v2608_v39 = vmul.f32 %v4356_v37, %v4348_v20  ;;  %v3227_v37 = vld [vmem:[#allocation5 + $0x258] sm:$0xff] }
 0xd4c   :  { %v2607_v40 = vmul.f32 %v4358_v38, %v4350_v21  ;;  %v4274_v38 = vpack.c.bf16 %v3227_v37, %v3226_v36 }
 0xd4d   :  { %4058 = vmatmul.mubr.msk.f32.vlgmr.msra.gmra.mrb[30].mxu1 %vm946_vm3, %v2608_v39  ;;  %v3228_v39 = vld [vmem:[#allocation5 + $0x260] sm:$0xff] }
 0xd4e   :  { %4053 = vmatmul.mubr.msk.f32.vlgmr.msra.gmra.mrb[28].mxu0 %vm946_vm3, %v2607_v40  ;;  %v3229_v40 = vld [vmem:[#allocation5 + $0x268] sm:$0xff] }
 0xd4f   :  { %4257 = vmatpush3.bf16.msra.mxu0 %v4254_v29  ;;  %v4278_v41 = vpack.c.bf16 %v3229_v40, %v3228_v39  ;;  %v3231_v29 = vld [vmem:[#allocation5 + $0x278] sm:$0xff] }
 0xd50   :  { %4259 = vmatprep.subr.bf16.mxu0 %v4258_v46  ;;  %v4282_v42 = vpack.c.bf16 %v3231_v29, %v3230_v26  ;;  %v3637_v26 = vld [vmem:[#allocation5 + $0x2db] ss:$0 sm:$0xff] }
 0xe10   :  { %v2751_v48 = vpop.f32.mrb[28].mxu1 }
 0xe11   :  { %v2678_v49 = vpop.f32.mrb[26].mxu0  ;;  %v4049_v50 = vpop.f32.mrb[29].mxu1 }
 0xe12   :  { %v4044_v52 = vpop.f32.mrb[27].mxu0 }
 0xe20   :  { %v2897_v53 = vpop.f32.mrb[30].mxu1 }
 0xe21   :  { %v2824_v54 = vpop.f32.mrb[28].mxu0  ;;  %v4059_v55 = vpop.f32.mrb[31].mxu1 }
 0xe22   :  { %v4054_v56 = vpop.f32.mrb[29].mxu0  ;;  %4064 = vmatprep.mubr.msk.f32.mxu0 %vm623_vm2, %v2824_v54 }
 0xe23   :  { %4065 = vmatmul.mubr.msk.f32.vlgmr.msra.gmra.mrb[30].mxu0 %vm623_vm2, %v2897_v53 }
 0xe24   :  { %4261 = vmatpush3.bf16.msra.mxu0 %v4258_v46  ;;  %4071 = vmatprep.mubr.msk.f32.mxu0 %vm623_vm2, %v2678_v49 }
 0xe25   :  { %4271 = vmatprep.subr.bf16.mxu0 %v4270_v35 }
 0xe2b   :  { %4072 = vmatmul.mubr.msk.f32.vlgmr.msra.gmra.mrb[30].mxu0 %vm623_vm2, %v2751_v48 }
 0xe2c   :  { %4273 = vmatpush3.bf16.msra.mxu0 %v4270_v35 }
 0xe2d   :  { %4275 = vmatprep.subr.bf16.mxu0 %v4274_v38 }
 0xe30   :  { %4277 = vmatpush3.bf16.msra.mxu0 %v4274_v38  ;;  %v3636_v38 = vld [vmem:[#allocation5 + $0x2da] ss:$0 sm:$0xff] }
 0xe31   :  { %4279 = vmatprep.subr.bf16.mxu0 %v4278_v41 }
 0xe34   :  { %4281 = vmatpush3.bf16.msra.mxu0 %v4278_v41 }
 0xe35   :  { %4283 = vmatprep.subr.bf16.mxu0 %v4282_v42 }
 0xe38   :  { %4285 = vmatpush3.bf16.msra.mxu0 %v4282_v42 }
 0xefe   :  { %v4073_v58 = vpop.f32.mrb[30].mxu0 }
 0xeff   :  { %v3073_v59 = vadd.f32 %v4073_v58, %v3627_v57  ;;  %v3058_v60 = vpop.f32.mrb[31].mxu0 }
 0xf00   :  { %v3072_v61 = vadd.f32 %v3627_v57, %v3058_v60 }
 0xf01   :  { %v3075_v62 = vadd.f32 %v3073_v59, %v4611_v5 }
 0xf02   :  { %v3074_v63 = vadd.f32 %v3072_v61, %v4609_v4  ;;  %v3116_v4 = vld [vmem:[#allocation5 + $0x220] sm:$0xff] }
 0xf03   :  { %v3081_v0 = vsel %vm47_vm0, %v3075_v62, 0.0  ;;  %v4262_v13 = vpack.c.bf16 %v3117_v44, %v3116_v4 }
 0xf04   :  { %3082 = vadd.xlane.f32.xlu1 %v3081_v0  ;;  %v3078_v1 = vsel %vm47_vm0, %v3074_v63, 0.0 }
 0xf05   :  { %3079 = vadd.xlane.f32.xlu0 %v3078_v1  ;;  %4263 = vmatprep.subr.bf16.mxu1 %v4262_v13 }
 0xf06   :  { %4265 = vmatpush3.bf16.msra.mxu1 %v4262_v13 }
 0xf07   :  { %4267 = vmatprep.subr.bf16.mxu1 %v4266_v47 }
 0xf0a   :  { %4269 = vmatpush3.bf16.msra.mxu1 %v4266_v47 }
 0xf91   :  { %v3083_v3 = vpop.xlane.xlu1 %3082 }
 0xf92   :  { %v3085_v6 = vmul.f32 0.03125, %v3083_v3  ;;  %v3080_v7 = vpop.xlane.xlu0 %3079 }
 0xf93   :  { %v3084_v8 = vmul.f32 0.03125, %v3080_v7 }
 0xf94   :  { %v3087_v9 = vsub.f32 %v3075_v62, %v3085_v6 }
 0xf95   :  { %v3086_v10 = vsub.f32 %v3074_v63, %v3084_v8 }
 0xf96   :  { %v3089_v11 = vmul.f32 %v3087_v9, %v3087_v9 }
 0xf97   :  { %v3088_v12 = vmul.f32 %v3086_v10, %v3086_v10 }
 0xf98   :  { %v3093_v51 = vsel %vm47_vm0, %v3089_v11, 0.0 }
 0xf99   :  { %3094 = vadd.xlane.f32.xlu1 %v3093_v51  ;;  %v3090_v5 = vsel %vm47_vm0, %v3088_v12, 0.0 }
 0xf9a   :  { %3091 = vadd.xlane.f32.xlu0 %v3090_v5 }
0x1026   :  { %v3095_v15 = vpop.xlane.xlu1 %3094 }
0x1027   :  { %v3097_v16 = vmul.f32 0.03125, %v3095_v15  ;;  %v3092_v17 = vpop.xlane.xlu0 %3091 }
0x1028   :  { %v3096_v18 = vmul.f32 0.03125, %v3092_v17 }
0x1029   :  { %v3099_v19 = vadd.f32 1e-05, %v3097_v16 }
0x102a   :  { %v3098_v20 = vadd.f32 1e-05, %v3096_v18 }
0x102b   :  { %4359 = vrsqrt.f32 %v3099_v19 }
0x102c   :  { %4361 = vrsqrt.f32 %v3098_v20 }
0x1035   :  { %v4360_v21 = vpop.eup %4359 }
0x1036   :  { %v4362_v23 = vpop.eup %4361  ;;  %v3103_v24 = vmul.f32 %v4360_v21, %v3087_v9  ;;  %v3633_v9 = vld [vmem:[#allocation5 + $0x2d9] ss:$0 sm:$0xff] }
0x1037   :  { %v3102_v25 = vmul.f32 %v4362_v23, %v3086_v10  ;;  %v3361_v23 = vld [vmem:[#allocation5 + $0x288] sm:$0xff] }
0x1038   :  { %v3109_v28 = vmul.f32 %v3628_v22, %v3103_v24 }
0x1039   :  { %v3108_v30 = vmul.f32 %v3628_v22, %v3102_v25  ;;  %v3360_v22 = vld [vmem:[#allocation5 + $0x280] sm:$0xff]  ;;  %v4452_v25 = vmov 0.0|0.0  }
0x103a   :  { %v3115_v32 = vadd.f32 %v3629_v27, %v3109_v28  ;;  %v4287_v24 = vpack.c.bf16 %v3361_v23, %v3360_v22  ;;  %4286 = vmatprep.subr.bf16.mxu1 %v4452_v25  ;;  %v3363_v28 = vld [vmem:[#allocation5 + $0x298] sm:$0xff] }
0x103b   :  { %v3114_v31 = vadd.f32 %v3629_v27, %v3108_v30  ;;  %v3362_v27 = vld [vmem:[#allocation5 + $0x290] sm:$0xff] }
0x103c   :  { %v4290_v30 = vpack.c.bf16 %v3363_v28, %v3362_v27 }
0x103d   :  { %4082 = vmatprep.mubr.msk.f32.mxu1 %vm47_vm0, %v3114_v31 }
0x103e   :  { %4083 = vmatmul.mubr.msk.f32.vlgmr.msra.gmra.mrb[32].mxu1 %vm47_vm0, %v3115_v32 }
0x103f   :  { %4112 = vmatprep.mubr.msk.f32.mxu1 %vm4450_vm1, %v4449_v2  ;;  %4288 = vmatpush3.bf16.msra.mxu1 %v4287_v24 }
0x1040   :  { %4289 = vmatprep.subr.bf16.mxu1 %v4452_v25 }
0x1043   :  { %4291 = vmatpush3.bf16.msra.mxu1 %v4290_v30 }
0x1044   :  { %4292 = vmatprep.subr.bf16.mxu1 %v4452_v25 }
0x1111   :  { %v4084_v46 = vpop.f32.mrb[32].mxu1 }
0x1112   :  { %v3203_v48 = vadd.f32 %v4084_v46, %v3630_v43  ;;  %v3197_v49 = vpop.f32.mrb[33].mxu1 }
0x1113   :  { %v3198_v50 = vadd.f32 %v3630_v43, %v3197_v49 }
0x1114   :  { %v3207_v52 = vmul.f32 %v3203_v48, %v3203_v48 }
0x1115   :  { %v3206_v53 = vmul.f32 %v3198_v50, %v3198_v50 }
0x1116   :  { %v3209_v54 = vmul.f32 %v3207_v52, %v3203_v48  ;;  %v3448_v52 = vld [vmem:[#allocation5 + $0x2a8] sm:$0xff] }
0x1117   :  { %v3208_v55 = vmul.f32 %v3206_v53, %v3198_v50  ;;  %v3449_v53 = vld [vmem:[#allocation5 + $0x2b0] sm:$0xff] }
0x1118   :  { %v3211_v56 = vmul.f32 0.044715, %v3209_v54 }
0x1119   :  { %v3210_v57 = vmul.f32 0.044715, %v3208_v55  ;;  %v3450_v55 = vld [vmem:[#allocation5 + $0x2b8] sm:$0xff] }
0x111a   :  { %v3213_v58 = vadd.f32 %v3211_v56, %v3203_v48  ;;  %v4296_v56 = vpack.c.bf16 %v3450_v55, %v3449_v53 }
0x111b   :  { %v3212_v59 = vadd.f32 %v3210_v57, %v3198_v50  ;;  %v3638_v57 = vld [vmem:[#allocation5 + $0x2dc] ss:$0 sm:$0xff] }
0x111c   :  { %v3215_v60 = vmul.f32 0.7978846, %v3213_v58 }
0x111d   :  { %v3214_v61 = vmul.f32 0.7978846, %v3212_v59 }
0x111e   :  { %4363 = vtanh.f32 %v3215_v60 }
0x111f   :  { %4365 = vtanh.f32 %v3214_v61 }
0x1128   :  { %v4364_v62 = vpop.eup %4363 }
0x1129   :  { %v4366_v63 = vpop.eup %4365  ;;  %v3219_v0 = vadd.f32 1.0, %v4364_v62  ;;  %v3640_v62 = vld [vmem:[#allocation5 + $0x2dd] ss:$0 sm:$0xff] }
0x112a   :  { %v3218_v1 = vadd.f32 1.0, %v4366_v63 }
0x112b   :  { %v3221_v3 = vmul.f32 0.5, %v3219_v0 }
0x112c   :  { %v3220_v6 = vmul.f32 0.5, %v3218_v1 }
0x112d   :  { %v3223_v8 = vmul.f32 %v3221_v3, %v3203_v48 }
0x112e   :  { %v3222_v7 = vmul.f32 %v3220_v6, %v3198_v50  ;;  %v3447_v50 = vld [vmem:[#allocation5 + $0x2a0] sm:$0xff] }
0x112f   :  { %v4293_v54 = vpack.c.bf16 %v3448_v52, %v3447_v50 }
0x1130   :  { %4101 = vmatprep.mubr.msk.f32.mxu0 %vm1619_vm4, %v3222_v7 }
0x1131   :  { %4102 = vmatmul.mubr.msk.f32.vlgmr.msra.gmra.mrb[32].mxu0 %vm1619_vm4, %v3223_v8 }
0x1204   :  { %v4103_v10 = vpop.f32.mrb[32].mxu0 }
0x1205   :  { %v3315_v11 = vadd.f32 %v4103_v10, %v3633_v9  ;;  %v3309_v12 = vpop.f32.mrb[33].mxu0 }
0x1206   :  { %v3310_v51 = vadd.f32 %v3633_v9, %v3309_v12 }
0x1207   :  { %v3319_v5 = vadd.f32 %v3315_v11, %v3115_v32 }
0x1208   :  { %v3318_v4 = vadd.f32 %v3310_v51, %v3114_v31 }
0x1209   :  { %v3325_v44 = vsel %vm47_vm0, %v3319_v5, 0.0 }
0x120a   :  { %3326 = vadd.xlane.f32.xlu0 %v3325_v44  ;;  %v3322_v13 = vsel %vm47_vm0, %v3318_v4, 0.0 }
0x120b   :  { %3323 = vadd.xlane.f32.xlu1 %v3322_v13 }
0x1297   :  { %v3327_v14 = vpop.xlane.xlu0 %3326 }
0x1298   :  { %v3329_v45 = vmul.f32 0.03125, %v3327_v14  ;;  %v3324_v47 = vpop.xlane.xlu1 %3323 }
0x1299   :  { %v3328_v15 = vmul.f32 0.03125, %v3324_v47 }
0x129a   :  { %v3331_v16 = vsub.f32 %v3319_v5, %v3329_v45 }
0x129b   :  { %v3330_v17 = vsub.f32 %v3318_v4, %v3328_v15 }
0x129c   :  { %v3333_v18 = vmul.f32 %v3331_v16, %v3331_v16 }
0x129d   :  { %v3332_v19 = vmul.f32 %v3330_v17, %v3330_v17 }
0x129e   :  { %v3337_v20 = vsel %vm47_vm0, %v3333_v18, 0.0 }
0x129f   :  { %3338 = vadd.xlane.f32.xlu0 %v3337_v20  ;;  %v3334_v21 = vsel %vm47_vm0, %v3332_v19, 0.0 }
0x12a0   :  { %3335 = vadd.xlane.f32.xlu1 %v3334_v21 }
0x132c   :  { %v3339_v31 = vpop.xlane.xlu0 %3338 }
0x132d   :  { %v3341_v32 = vmul.f32 0.03125, %v3339_v31  ;;  %v3336_v33 = vpop.xlane.xlu1 %3335 }
0x132e   :  { %v3340_v34 = vmul.f32 0.03125, %v3336_v33 }
0x132f   :  { %v3343_v35 = vadd.f32 1e-05, %v3341_v32 }
0x1330   :  { %v3342_v36 = vadd.f32 1e-05, %v3340_v34 }
0x1331   :  { %4367 = vrsqrt.f32 %v3343_v35 }
0x1332   :  { %4369 = vrsqrt.f32 %v3342_v36 }
0x133b   :  { %v4368_v37 = vpop.eup %4367 }
0x133c   :  { %v4370_v39 = vpop.eup %4369  ;;  %v3347_v40 = vmul.f32 %v4368_v37, %v3331_v16 }
0x133d   :  { %v3346_v41 = vmul.f32 %v4370_v39, %v3330_v17 }
0x133e   :  { %v3353_v29 = vmul.f32 %v3636_v38, %v3347_v40 }
0x133f   :  { %v3352_v42 = vmul.f32 %v3636_v38, %v3346_v41 }
0x1340   :  { %v3359_v43 = vadd.f32 %v3637_v26, %v3353_v29 }
0x1341   :  { %v3358_v46 = vadd.f32 %v3637_v26, %v3352_v42 }
0x1342   :  { %v3371_v48 = vrot.slane %v3359_v43, 7 }
0x1344   :  { %v3373_v49 = vsel %vm3372_vm5, %v3371_v48, %v3358_v46 }
0x1345   :  { %4113 = vmatmul.mubr.msk.f32.vlgmr.msra.gmra.mrb[34].mxu1 %vm47_vm0, %v3373_v49 }
0x1346   :  { %4123 = vmatprep.mubr.msk.f32.mxu1 %vm4450_vm1, %v4449_v2  ;;  %4294 = vmatpush3.bf16.msra.mxu1 %v4293_v54 }
0x1347   :  { %4295 = vmatprep.subr.bf16.mxu1 %v4452_v25 }
0x134a   :  { %4297 = vmatpush3.bf16.msra.mxu1 %v4296_v56 }
0x1418   :  { %v3442_v58 = vpop.f32.mrb[34].mxu1 }
0x1419   :  { %v3443_v59 = vadd.f32 %v3638_v57, %v3442_v58  ;;  %v4114_v60 = vpop.f32.mrb[35].mxu1 }
0x141b   :  { %4371 = vtanh.f32 %v3443_v59 }
0x1425   :  { %v4372_v61 = vpop.eup %4371 }
0x1426   :  { %4124 = vmatmul.mubr.msk.f32.vlgmr.msra.gmra.mrb[36].mxu1 %vm47_vm0, %v4372_v61 }
0x14f9   :  { %v3525_v2 = vpop.f32.mrb[36].mxu1 }
0x14fa   :  { %v3526_v63 = vadd.f32 %v3640_v62, %v3525_v2  ;;  %v4125_v0 = vpop.f32.mrb[37].mxu1 }
0x14fc   :  { %3529 = vst [vmem:[#allocation7] sm:$0x3] %v3526_v63 }
0x14fd   :  { %4428 = shalt.err (!%p4425_p6)
}
0x14fe   :  { %s4429_s15 = scalar_lea.hbm %s4730_s3, 32 }
0x14ff   :  { %p4430_p7 = scmp.ne.s32.totalorder %s4730_s3, %s4429_s15  ;;  %p4433_p8 = scmp.lt.u32.totalorder %s4429_s15, %s4730_s3 }
0x1501   :  { %p4435_p9 = pnand %p4433_p8, %p4430_p7 }
0x1503   :  { %4438 = shalt.err (!%p4435_p9)
}
0x1504   :  { %3539 = dma.vmem_to_hbm [thread:$0]  %s3537_s11, 32, %s4730_s3, [#allocation4]  }
0x1505   :  { %4443 = dma.done.wait [#allocation4], 32  }
0x1506   :  { %4444 = vsyncadd [#allocation4], 4294967264 }
0x1507   :  { %3543 = vsyncpa [#allocation3], 1 }
0x1508   :  { %3544 = vsyncpa [#allocation6], 1 }
0x1509   :  { %3545 = vsyncpa [#allocation4], 1 }

</bundles_post_ra>
